<compile_context>
chip_gen: v7x
topology: tpu7x:2x2x1
jax: 0.10.0
libtpu: 0.0.40
codegen_flags: <defaults>
</compile_context>

<pallas_src>
import functools

import jax
import jax.numpy as jnp
import numpy as np
from jax import lax
from jax.experimental import pallas as pl
from jax.experimental.pallas import tpu as pltpu


# ------------------------------- Pallas kernel ------------------------------ #

def _apply_act(v, act):
    if act == "relu":
        return jnp.maximum(v, 0.0)
    if act == "swish":
        return v * jax.nn.sigmoid(v)
    return v


def _fused_mbconv3d_kernel(x_ref, w0_ref, b0_ref, wdw_ref, b1_ref, wp_ref, b2_ref,
                           m_ref, o_ref, yp_ref, *,
                           ksize, has_expand, act, H, W, S, P, expc, add_residual):
    # x_ref:  (1, inc, S)   flattened NCDHW input slab (lane axis = S)
    # w0_ref: (expc, inc)   expand weights (BN0 scale folded), b0_ref: (expc, 1)
    # wdw_ref:(expc, k^3)   depthwise taps (BN1 scale folded), b1_ref: (expc, 1)
    # wp_ref: (ouc, expc)   project weights (BN2 scale folded), b2_ref: (ouc, 1)
    # m_ref:  (k*k, S)      H/W border-validity masks (float32, 1.0 = valid)
    # o_ref:  (1, ouc, S)   output slab
    # yp_ref: (expc, S+2P)  VMEM scratch, zero-padded staging for the depthwise taps
    HW = H * W
    pad = (ksize - 1) // 2

    x_f = x_ref[0].astype(jnp.float32)                       # (inc, S), lane-dense

    # ---- expand 1x1x1 conv + BN0 + act  (MXU matmul, f32 accumulation) ----
    if has_expand:
        y = jnp.dot(w0_ref[...], x_f, preferred_element_type=jnp.float32)  # (expc, S)
        y = _apply_act(y + b0_ref[...], act)
    else:
        y = x_f

    # Stage the expanded activation in a zero-padded scratch so every depthwise tap
    # becomes a contiguous static slice along the lane axis.
    if P > 0:
        yp_ref[:, :P] = jnp.zeros((expc, P), jnp.float32)
        yp_ref[:, P + S:] = jnp.zeros((expc, P), jnp.float32)
    yp_ref[:, P:P + S] = y

    # ---- depthwise k^3 conv + BN1 + act ----
    # For each kh: build the three per-kw partials from the kw-centre slices only
    # (sum over kd), then shift the kw != centre partials with pltpu.roll (XLU) and
    # apply the H/W mask once per (kh, kw).  Roll wrap lanes are killed by the kw mask.
    acc = None
    for kh in range(ksize):
        s = [None] * ksize                                   # per-kw partial, summed over kd
        for kd in range(ksize):
            dc = (kd - pad) * HW + (kh - pad) * W            # kw-centre offset
            center = yp_ref[:, P + dc:P + dc + S]            # (expc, S) contiguous slice
            for kw in range(ksize):
                t = kd * ksize * ksize + kh * ksize + kw
                term = wdw_ref[:, t:t + 1] * center
                s[kw] = term if s[kw] is None else s[kw] + term
        for kw in range(ksize):
            part = s[kw]
            if kw != pad:
                part = pltpu.roll(part, shift=(pad - kw) % S, axis=1)
            if kh != pad or kw != pad:
                r = kh * ksize + kw
                part = part * m_ref[r:r + 1, :]
            acc = part if acc is None else acc + part
    z = _apply_act(acc + b1_ref[...], act)

    # ---- project 1x1x1 conv + BN2 (+ residual)  (MXU matmul) ----
    out = jnp.dot(wp_ref[...], z, preferred_element_type=jnp.float32)       # (ouc, S)
    out = out + b2_ref[...]
    if add_residual:
        out = out + x_f
    o_ref[0] = out.astype(o_ref.dtype)


# ------------------------------ pallas_call glue ----------------------------- #

def _fold_bn(gamma, beta, mean, var, eps):
    scale = gamma / jnp.sqrt(var + eps)
    bias = beta - mean * scale
    return scale, bias


def _make_hw_masks(D, H, W, ksize):
    """Host-precomputed validity masks for the H/W offsets of each (kh, kw) tap."""
    p = (ksize - 1) // 2
    S = D * H * W
    hh = (np.arange(S) // W) % H
    ww = np.arange(S) % W
    rows = []
    for kh in range(ksize):
        for kw in range(ksize):
            hs = hh + kh - p
            ws = ww + kw - p
            valid = (hs >= 0) & (hs < H) & (ws >= 0) & (ws < W)
            rows.append(valid.astype(np.float32))
    return jnp.asarray(np.stack(rows, axis=0))                 # (k*k, S)


def transform3d_pallas(x, params, *, inc, ouc, ksize, stride, expand_ratio, eps):
    assert stride == 1, "only stride=1 supported (residual path)"
    N, C, D, H, W = x.shape
    assert C == inc
    S = D * H * W
    expc = round(ouc * expand_ratio)
    has_expand = expand_ratio != 1
    act = "relu" if has_expand else "swish"
    p = (ksize - 1) // 2
    # Left/right zero pad (in flattened elements) so all tap slices stay in-bounds;
    # rounded up to a lane multiple so the scratch writes stay lane-aligned.
    P = -(-(p * (H * W + W + 1)) // 128) * 128 if p > 0 else 0

    x3 = x.reshape(N, inc, S)                                  # pure reshape, no transpose

    if has_expand:
        s0, b0 = _fold_bn(*params["bn0"], eps)
        w0 = params["w_exp"][:, :, 0, 0, 0] * s0[:, None]      # (expc, inc)
        b0 = b0.reshape(expc, 1)
    else:
        assert inc == expc
        w0 = jnp.zeros((expc, inc), jnp.float32)
        b0 = jnp.zeros((expc, 1), jnp.float32)

    s1, b1 = _fold_bn(*params["bn1"], eps)
    wdw = params["w_dw"][:, 0].reshape(expc, ksize ** 3) * s1[:, None]   # (expc, k^3)
    b1 = b1.reshape(expc, 1)

    s2, b2 = _fold_bn(*params["bn2"], eps)
    wp = params["w_proj"][:, :, 0, 0, 0] * s2[:, None]         # (ouc, expc)
    b2 = b2.reshape(ouc, 1)

    masks = _make_hw_masks(D, H, W, ksize)                     # (k*k, S)

    kern = functools.partial(
        _fused_mbconv3d_kernel, ksize=ksize, has_expand=has_expand, act=act,
        H=H, W=W, S=S, P=P, expc=expc,
        add_residual=(inc == ouc and stride == 1))

    # Explicit scoped-VMEM budget: blocks (double-buffered) + weights + mask table +
    # padded scratch + live f32 temporaries, with headroom; clamp to [16 MiB, 64 MiB].
    f32b = 4
    est = (2 * (inc * S + ouc * S) * f32b
           + (expc * inc + expc * ksize ** 3 + ouc * expc + 2 * expc + ouc) * f32b
           + ksize * ksize * S * f32b
           + expc * (S + 2 * P) * f32b
           + 12 * expc * S * f32b
           + (2 << 20))
    vmem_limit = int(min(max(est, 16 * 2 ** 20), 64 * 2 ** 20))

    out3 = pl.pallas_call(
        kern,
        out_shape=jax.ShapeDtypeStruct((N, ouc, S), x.dtype),
        grid_spec=pltpu.PrefetchScalarGridSpec(
            num_scalar_prefetch=0,
            grid=(N,),
            in_specs=[
                pl.BlockSpec((1, inc, S), lambda n: (n, 0, 0)),
                pl.BlockSpec((expc, inc), lambda n: (0, 0)),
                pl.BlockSpec((expc, 1), lambda n: (0, 0)),
                pl.BlockSpec((expc, ksize ** 3), lambda n: (0, 0)),
                pl.BlockSpec((expc, 1), lambda n: (0, 0)),
                pl.BlockSpec((ouc, expc), lambda n: (0, 0)),
                pl.BlockSpec((ouc, 1), lambda n: (0, 0)),
                pl.BlockSpec((ksize * ksize, S), lambda n: (0, 0)),
            ],
            out_specs=pl.BlockSpec((1, ouc, S), lambda n: (n, 0, 0)),
            scratch_shapes=[pltpu.VMEM((expc, S + 2 * P), jnp.float32)],
        ),
        compiler_params=pltpu.CompilerParams(
            dimension_semantics=("parallel",),
            vmem_limit_bytes=vmem_limit),
    )(x3, w0, b0, wdw, b1, wp, b2, masks)

    return out3.reshape(N, ouc, D, H, W)                       # back to NCDHW


# ------------------------------ pure-JAX reference --------------------------- #

def transform3d_ref(x, params, *, inc, ouc, ksize, stride, expand_ratio, eps):
    expc = round(ouc * expand_ratio)
    act = ((lambda z: jnp.maximum(z, 0.0)) if expand_ratio != 1
           else (lambda z: z * jax.nn.sigmoid(z)))

    def bn(z, g, b, m, v):
        sh = (1, -1, 1, 1, 1)
        return ((z - m.reshape(sh)) / jnp.sqrt(v.reshape(sh) + eps)
                * g.reshape(sh) + b.reshape(sh))

    dn = ("NCDHW", "OIDHW", "NCDHW")
    y = x
    if expand_ratio != 1:
        y = lax.conv_general_dilated(y, params["w_exp"], (1, 1, 1), "VALID",
                                     dimension_numbers=dn)
        y = act(bn(y, *params["bn0"]))
    y = lax.conv_general_dilated(y, params["w_dw"], (stride,) * 3, "SAME",
                                 dimension_numbers=dn, feature_group_count=expc)
    y = act(bn(y, *params["bn1"]))
    y = lax.conv_general_dilated(y, params["w_proj"], (1, 1, 1), "VALID",
                                 dimension_numbers=dn)
    y = bn(y, *params["bn2"])
    if inc == ouc and stride == 1:
        y = y + x
    return y


# ------------------------------ params / main -------------------------------- #

def init_params(key, inc, ouc, ksize, expand_ratio):
    expc = round(ouc * expand_ratio)
    ks = jax.random.split(key, 15)

    def bn_stats(k0, k1, k2, k3, c):
        gamma = 1.0 + 0.1 * jax.random.normal(k0, (c,), jnp.float32)
        beta = 0.05 * jax.random.normal(k1, (c,), jnp.float32)
        mean = 0.02 * jax.random.normal(k2, (c,), jnp.float32)
        var = 0.9 + 0.1 * jnp.abs(jax.random.normal(k3, (c,), jnp.float32))
        return (gamma, beta, mean, var)

    params = {
        "w_exp": 0.1 * jax.random.normal(ks[0], (expc, inc, 1, 1, 1), jnp.float32),
        "bn0": bn_stats(ks[1], ks[2], ks[3], ks[4], expc),
        "w_dw": 0.1 * jax.random.normal(ks[5], (expc, 1, ksize, ksize, ksize),
                                        jnp.float32),
        "bn1": bn_stats(ks[6], ks[7], ks[8], ks[9], expc),
        "w_proj": 0.1 * jax.random.normal(ks[10], (ouc, expc, 1, 1, 1),
                                          jnp.float32),
        "bn2": bn_stats(ks[11], ks[12], ks[13], ks[14], ouc),
    }
    return params


if __name__ == "__main__":
    inc, ouc, ksize, stride, expand_ratio = 4, 4, 3, 1, 2.0
    eps = 0.001
    N, D, H, W = 2, 8, 8, 8

    key = jax.random.PRNGKey(0)
    kx, kp = jax.random.split(key)
    x = jax.random.normal(kx, (N, inc, D, H, W), jnp.float32)
    params = init_params(kp, inc, ouc, ksize, expand_ratio)

    out = transform3d_pallas(x, params, inc=inc, ouc=ouc, ksize=ksize,
                             stride=stride, expand_ratio=expand_ratio, eps=eps)
    out = jax.block_until_ready(out)

    ref = transform3d_ref(x, params, inc=inc, ouc=ouc, ksize=ksize,
                          stride=stride, expand_ratio=expand_ratio, eps=eps)
    np.testing.assert_allclose(np.asarray(out), np.asarray(ref),
                               rtol=2e-4, atol=2e-4)
    print("KERNEL_OK")
</pallas_src>

<mosaic_0001>
module attributes {stable_mosaic.version = 11 : i64} {
  func.func @_fused_mbconv3d_kernel(%arg0: i32, %arg1: memref<1x4x512xf32, #tpu.memory_space<vmem>>, %arg2: memref<8x4xf32, #tpu.memory_space<vmem>>, %arg3: memref<8x1xf32, #tpu.memory_space<vmem>>, %arg4: memref<8x27xf32, #tpu.memory_space<vmem>>, %arg5: memref<8x1xf32, #tpu.memory_space<vmem>>, %arg6: memref<4x8xf32, #tpu.memory_space<vmem>>, %arg7: memref<4x1xf32, #tpu.memory_space<vmem>>, %arg8: memref<9x512xf32, #tpu.memory_space<vmem>>, %arg9: memref<1x4x512xf32, #tpu.memory_space<vmem>>, %arg10: memref<8x768xf32, #tpu.memory_space<vmem>>) attributes {dimension_semantics = [#tpu.dimension_semantics<parallel>], iteration_bounds = array<i64: 2>, scalar_prefetch = 0 : i64, scratch_operands = 1 : i64, tpu.core_type = #tpu.core_type<tc>, window_params = [{transform_indices = @transform_0, window_bounds = array<i64: 1, 4, 512>}, {pipeline_mode = #tpu.pipeline_mode<synchronous>, transform_indices = @transform_1, window_bounds = array<i64: 8, 4>}, {pipeline_mode = #tpu.pipeline_mode<synchronous>, transform_indices = @transform_2, window_bounds = array<i64: 8, 1>}, {pipeline_mode = #tpu.pipeline_mode<synchronous>, transform_indices = @transform_3, window_bounds = array<i64: 8, 27>}, {pipeline_mode = #tpu.pipeline_mode<synchronous>, transform_indices = @transform_4, window_bounds = array<i64: 8, 1>}, {pipeline_mode = #tpu.pipeline_mode<synchronous>, transform_indices = @transform_5, window_bounds = array<i64: 4, 8>}, {pipeline_mode = #tpu.pipeline_mode<synchronous>, transform_indices = @transform_6, window_bounds = array<i64: 4, 1>}, {pipeline_mode = #tpu.pipeline_mode<synchronous>, transform_indices = @transform_7, window_bounds = array<i64: 9, 512>}, {transform_indices = @transform_8, window_bounds = array<i64: 1, 4, 512>}]} {
    %c0 = arith.constant 0 : index
    %c0_0 = arith.constant 0 : index
    %c0_1 = arith.constant 0 : index
    %0 = vector.load %arg1[%c0, %c0_0, %c0_1] : memref<1x4x512xf32, #tpu.memory_space<vmem>>, vector<1x4x512xf32>
    %1 = vector.shape_cast %0 : vector<1x4x512xf32> to vector<4x512xf32>
    %c0_2 = arith.constant 0 : index
    %c0_3 = arith.constant 0 : index
    %2 = vector.load %arg2[%c0_2, %c0_3] : memref<8x4xf32, #tpu.memory_space<vmem>>, vector<8x4xf32>
    %cst = arith.constant dense<0.000000e+00> : vector<8x512xf32>
    %3 = tpu.matmul %2, %1, %cst {dimension_numbers = #tpu.dot_dimension_numbers<[1], [0], [0], [1], [0, 0, 1, 1], [], []>} : vector<8x4xf32>, vector<4x512xf32>, vector<8x512xf32> -> vector<8x512xf32>
    %c0_4 = arith.constant 0 : index
    %c0_5 = arith.constant 0 : index
    %4 = vector.load %arg3[%c0_4, %c0_5] : memref<8x1xf32, #tpu.memory_space<vmem>>, vector<8x1xf32>
    %5 = vector.broadcast %4 : vector<8x1xf32> to vector<8x512xf32>
    %6 = arith.addf %3, %5 : vector<8x512xf32>
    %cst_6 = arith.constant 0.000000e+00 : f32
    %7 = vector.broadcast %cst_6 : f32 to vector<8x512xf32>
    %8 = arith.maximumf %6, %7 : vector<8x512xf32>
    %cst_7 = arith.constant 0.000000e+00 : f32
    %9 = vector.broadcast %cst_7 : f32 to vector<8x128xf32>
    %c0_8 = arith.constant 0 : index
    %c0_9 = arith.constant 0 : index
    %10 = vector.load %arg10[%c0_8, %c0_9] : memref<8x768xf32, #tpu.memory_space<vmem>>, vector<8x128xf32>
    tpu.vector_store %arg10[%c0_8, %c0_9], %9 {strides = array<i32>} : memref<8x768xf32, #tpu.memory_space<vmem>>, vector<8x128xf32>,
    %cst_10 = arith.constant 0.000000e+00 : f32
    %11 = vector.broadcast %cst_10 : f32 to vector<8x128xf32>
    %c0_11 = arith.constant 0 : index
    %c640 = arith.constant 640 : index
    %12 = vector.load %arg10[%c0_11, %c640] : memref<8x768xf32, #tpu.memory_space<vmem>>, vector<8x128xf32>
    tpu.vector_store %arg10[%c0_11, %c640], %11 {strides = array<i32>} : memref<8x768xf32, #tpu.memory_space<vmem>>, vector<8x128xf32>,
    %c0_12 = arith.constant 0 : index
    %c128 = arith.constant 128 : index
    %13 = vector.load %arg10[%c0_12, %c128] : memref<8x768xf32, #tpu.memory_space<vmem>>, vector<8x512xf32>
    tpu.vector_store %arg10[%c0_12, %c128], %8 {strides = array<i32>} : memref<8x768xf32, #tpu.memory_space<vmem>>, vector<8x512xf32>,
    %c0_13 = arith.constant 0 : index
    %c56 = arith.constant 56 : index
    %14 = vector.load %arg10[%c0_13, %c56] : memref<8x768xf32, #tpu.memory_space<vmem>>, vector<8x512xf32>
    %c0_14 = arith.constant 0 : index
    %c0_15 = arith.constant 0 : index
    %15 = vector.load %arg4[%c0_14, %c0_15] : memref<8x27xf32, #tpu.memory_space<vmem>>, vector<8x1xf32>
    %16 = vector.broadcast %15 : vector<8x1xf32> to vector<8x512xf32>
    %17 = arith.mulf %16, %14 : vector<8x512xf32>
    %c0_16 = arith.constant 0 : index
    %c1 = arith.constant 1 : index
    %18 = vector.load %arg4[%c0_16, %c1] : memref<8x27xf32, #tpu.memory_space<vmem>>, vector<8x1xf32>
    %19 = vector.broadcast %18 : vector<8x1xf32> to vector<8x512xf32>
    %20 = arith.mulf %19, %14 : vector<8x512xf32>
    %c0_17 = arith.constant 0 : index
    %c2 = arith.constant 2 : index
    %21 = vector.load %arg4[%c0_17, %c2] : memref<8x27xf32, #tpu.memory_space<vmem>>, vector<8x1xf32>
    %22 = vector.broadcast %21 : vector<8x1xf32> to vector<8x512xf32>
    %23 = arith.mulf %22, %14 : vector<8x512xf32>
    %c0_18 = arith.constant 0 : index
    %c120 = arith.constant 120 : index
    %24 = vector.load %arg10[%c0_18, %c120] : memref<8x768xf32, #tpu.memory_space<vmem>>, vector<8x512xf32>
    %c0_19 = arith.constant 0 : index
    %c9 = arith.constant 9 : index
    %25 = vector.load %arg4[%c0_19, %c9] : memref<8x27xf32, #tpu.memory_space<vmem>>, vector<8x1xf32>
    %26 = vector.broadcast %25 : vector<8x1xf32> to vector<8x512xf32>
    %27 = arith.mulf %26, %24 : vector<8x512xf32>
    %28 = arith.addf %17, %27 : vector<8x512xf32>
    %c0_20 = arith.constant 0 : index
    %c10 = arith.constant 10 : index
    %29 = vector.load %arg4[%c0_20, %c10] : memref<8x27xf32, #tpu.memory_space<vmem>>, vector<8x1xf32>
    %30 = vector.broadcast %29 : vector<8x1xf32> to vector<8x512xf32>
    %31 = arith.mulf %30, %24 : vector<8x512xf32>
    %32 = arith.addf %20, %31 : vector<8x512xf32>
    %c0_21 = arith.constant 0 : index
    %c11 = arith.constant 11 : index
    %33 = vector.load %arg4[%c0_21, %c11] : memref<8x27xf32, #tpu.memory_space<vmem>>, vector<8x1xf32>
    %34 = vector.broadcast %33 : vector<8x1xf32> to vector<8x512xf32>
    %35 = arith.mulf %34, %24 : vector<8x512xf32>
    %36 = arith.addf %23, %35 : vector<8x512xf32>
    %c0_22 = arith.constant 0 : index
    %c184 = arith.constant 184 : index
    %37 = vector.load %arg10[%c0_22, %c184] : memref<8x768xf32, #tpu.memory_space<vmem>>, vector<8x512xf32>
    %c0_23 = arith.constant 0 : index
    %c18 = arith.constant 18 : index
    %38 = vector.load %arg4[%c0_23, %c18] : memref<8x27xf32, #tpu.memory_space<vmem>>, vector<8x1xf32>
    %39 = vector.broadcast %38 : vector<8x1xf32> to vector<8x512xf32>
    %40 = arith.mulf %39, %37 : vector<8x512xf32>
    %41 = arith.addf %28, %40 : vector<8x512xf32>
    %c0_24 = arith.constant 0 : index
    %c19 = arith.constant 19 : index
    %42 = vector.load %arg4[%c0_24, %c19] : memref<8x27xf32, #tpu.memory_space<vmem>>, vector<8x1xf32>
    %43 = vector.broadcast %42 : vector<8x1xf32> to vector<8x512xf32>
    %44 = arith.mulf %43, %37 : vector<8x512xf32>
    %45 = arith.addf %32, %44 : vector<8x512xf32>
    %c0_25 = arith.constant 0 : index
    %c20 = arith.constant 20 : index
    %46 = vector.load %arg4[%c0_25, %c20] : memref<8x27xf32, #tpu.memory_space<vmem>>, vector<8x1xf32>
    %47 = vector.broadcast %46 : vector<8x1xf32> to vector<8x512xf32>
    %48 = arith.mulf %47, %37 : vector<8x512xf32>
    %49 = arith.addf %36, %48 : vector<8x512xf32>
    %c1_i32 = arith.constant 1 : i32
    %50 = tpu.dynamic_rotate %41 by %c1_i32 dim 1 : vector<8x512xf32>, i32 -> vector<8x512xf32>
    %c0_26 = arith.constant 0 : index
    %c0_27 = arith.constant 0 : index
    %51 = vector.load %arg8[%c0_26, %c0_27] : memref<9x512xf32, #tpu.memory_space<vmem>>, vector<1x512xf32>
    %52 = vector.broadcast %51 : vector<1x512xf32> to vector<8x512xf32>
    %53 = arith.mulf %50, %52 : vector<8x512xf32>
    %c1_28 = arith.constant 1 : index
    %c0_29 = arith.constant 0 : index
    %54 = vector.load %arg8[%c1_28, %c0_29] : memref<9x512xf32, #tpu.memory_space<vmem>>, vector<1x512xf32>
    %55 = vector.broadcast %54 : vector<1x512xf32> to vector<8x512xf32>
    %56 = arith.mulf %45, %55 : vector<8x512xf32>
    %57 = arith.addf %53, %56 : vector<8x512xf32>
    %c511_i32 = arith.constant 511 : i32
    %58 = tpu.dynamic_rotate %49 by %c511_i32 dim 1 : vector<8x512xf32>, i32 -> vector<8x512xf32>
    %c2_30 = arith.constant 2 : index
    %c0_31 = arith.constant 0 : index
    %59 = vector.load %arg8[%c2_30, %c0_31] : memref<9x512xf32, #tpu.memory_space<vmem>>, vector<1x512xf32>
    %60 = vector.broadcast %59 : vector<1x512xf32> to vector<8x512xf32>
    %61 = arith.mulf %58, %60 : vector<8x512xf32>
    %62 = arith.addf %57, %61 : vector<8x512xf32>
    %c0_32 = arith.constant 0 : index
    %c64 = arith.constant 64 : index
    %63 = vector.load %arg10[%c0_32, %c64] : memref<8x768xf32, #tpu.memory_space<vmem>>, vector<8x512xf32>
    %c0_33 = arith.constant 0 : index
    %c3 = arith.constant 3 : index
    %64 = vector.load %arg4[%c0_33, %c3] : memref<8x27xf32, #tpu.memory_space<vmem>>, vector<8x1xf32>
    %65 = vector.broadcast %64 : vector<8x1xf32> to vector<8x512xf32>
    %66 = arith.mulf %65, %63 : vector<8x512xf32>
    %c0_34 = arith.constant 0 : index
    %c4 = arith.constant 4 : index
    %67 = vector.load %arg4[%c0_34, %c4] : memref<8x27xf32, #tpu.memory_space<vmem>>, vector<8x1xf32>
    %68 = vector.broadcast %67 : vector<8x1xf32> to vector<8x512xf32>
    %69 = arith.mulf %68, %63 : vector<8x512xf32>
    %c0_35 = arith.constant 0 : index
    %c5 = arith.constant 5 : index
    %70 = vector.load %arg4[%c0_35, %c5] : memref<8x27xf32, #tpu.memory_space<vmem>>, vector<8x1xf32>
    %71 = vector.broadcast %70 : vector<8x1xf32> to vector<8x512xf32>
    %72 = arith.mulf %71, %63 : vector<8x512xf32>
    %c0_36 = arith.constant 0 : index
    %c128_37 = arith.constant 128 : index
    %73 = vector.load %arg10[%c0_36, %c128_37] : memref<8x768xf32, #tpu.memory_space<vmem>>, vector<8x512xf32>
    %c0_38 = arith.constant 0 : index
    %c12 = arith.constant 12 : index
    %74 = vector.load %arg4[%c0_38, %c12] : memref<8x27xf32, #tpu.memory_space<vmem>>, vector<8x1xf32>
    %75 = vector.broadcast %74 : vector<8x1xf32> to vector<8x512xf32>
    %76 = arith.mulf %75, %73 : vector<8x512xf32>
    %77 = arith.addf %66, %76 : vector<8x512xf32>
    %c0_39 = arith.constant 0 : index
    %c13 = arith.constant 13 : index
    %78 = vector.load %arg4[%c0_39, %c13] : memref<8x27xf32, #tpu.memory_space<vmem>>, vector<8x1xf32>
    %79 = vector.broadcast %78 : vector<8x1xf32> to vector<8x512xf32>
    %80 = arith.mulf %79, %73 : vector<8x512xf32>
    %81 = arith.addf %69, %80 : vector<8x512xf32>
    %c0_40 = arith.constant 0 : index
    %c14 = arith.constant 14 : index
    %82 = vector.load %arg4[%c0_40, %c14] : memref<8x27xf32, #tpu.memory_space<vmem>>, vector<8x1xf32>
    %83 = vector.broadcast %82 : vector<8x1xf32> to vector<8x512xf32>
    %84 = arith.mulf %83, %73 : vector<8x512xf32>
    %85 = arith.addf %72, %84 : vector<8x512xf32>
    %c0_41 = arith.constant 0 : index
    %c192 = arith.constant 192 : index
    %86 = vector.load %arg10[%c0_41, %c192] : memref<8x768xf32, #tpu.memory_space<vmem>>, vector<8x512xf32>
    %c0_42 = arith.constant 0 : index
    %c21 = arith.constant 21 : index
    %87 = vector.load %arg4[%c0_42, %c21] : memref<8x27xf32, #tpu.memory_space<vmem>>, vector<8x1xf32>
    %88 = vector.broadcast %87 : vector<8x1xf32> to vector<8x512xf32>
    %89 = arith.mulf %88, %86 : vector<8x512xf32>
    %90 = arith.addf %77, %89 : vector<8x512xf32>
    %c0_43 = arith.constant 0 : index
    %c22 = arith.constant 22 : index
    %91 = vector.load %arg4[%c0_43, %c22] : memref<8x27xf32, #tpu.memory_space<vmem>>, vector<8x1xf32>
    %92 = vector.broadcast %91 : vector<8x1xf32> to vector<8x512xf32>
    %93 = arith.mulf %92, %86 : vector<8x512xf32>
    %94 = arith.addf %81, %93 : vector<8x512xf32>
    %c0_44 = arith.constant 0 : index
    %c23 = arith.constant 23 : index
    %95 = vector.load %arg4[%c0_44, %c23] : memref<8x27xf32, #tpu.memory_space<vmem>>, vector<8x1xf32>
    %96 = vector.broadcast %95 : vector<8x1xf32> to vector<8x512xf32>
    %97 = arith.mulf %96, %86 : vector<8x512xf32>
    %98 = arith.addf %85, %97 : vector<8x512xf32>
    %c1_i32_45 = arith.constant 1 : i32
    %99 = tpu.dynamic_rotate %90 by %c1_i32_45 dim 1 : vector<8x512xf32>, i32 -> vector<8x512xf32>
    %c3_46 = arith.constant 3 : index
    %c0_47 = arith.constant 0 : index
    %100 = vector.load %arg8[%c3_46, %c0_47] : memref<9x512xf32, #tpu.memory_space<vmem>>, vector<1x512xf32>
    %101 = vector.broadcast %100 : vector<1x512xf32> to vector<8x512xf32>
    %102 = arith.mulf %99, %101 : vector<8x512xf32>
    %103 = arith.addf %62, %102 : vector<8x512xf32>
    %104 = arith.addf %103, %94 : vector<8x512xf32>
    %c511_i32_48 = arith.constant 511 : i32
    %105 = tpu.dynamic_rotate %98 by %c511_i32_48 dim 1 : vector<8x512xf32>, i32 -> vector<8x512xf32>
    %c5_49 = arith.constant 5 : index
    %c0_50 = arith.constant 0 : index
    %106 = vector.load %arg8[%c5_49, %c0_50] : memref<9x512xf32, #tpu.memory_space<vmem>>, vector<1x512xf32>
    %107 = vector.broadcast %106 : vector<1x512xf32> to vector<8x512xf32>
    %108 = arith.mulf %105, %107 : vector<8x512xf32>
    %109 = arith.addf %104, %108 : vector<8x512xf32>
    %c0_51 = arith.constant 0 : index
    %c72 = arith.constant 72 : index
    %110 = vector.load %arg10[%c0_51, %c72] : memref<8x768xf32, #tpu.memory_space<vmem>>, vector<8x512xf32>
    %c0_52 = arith.constant 0 : index
    %c6 = arith.constant 6 : index
    %111 = vector.load %arg4[%c0_52, %c6] : memref<8x27xf32, #tpu.memory_space<vmem>>, vector<8x1xf32>
    %112 = vector.broadcast %111 : vector<8x1xf32> to vector<8x512xf32>
    %113 = arith.mulf %112, %110 : vector<8x512xf32>
    %c0_53 = arith.constant 0 : index
    %c7 = arith.constant 7 : index
    %114 = vector.load %arg4[%c0_53, %c7] : memref<8x27xf32, #tpu.memory_space<vmem>>, vector<8x1xf32>
    %115 = vector.broadcast %114 : vector<8x1xf32> to vector<8x512xf32>
    %116 = arith.mulf %115, %110 : vector<8x512xf32>
    %c0_54 = arith.constant 0 : index
    %c8 = arith.constant 8 : index
    %117 = vector.load %arg4[%c0_54, %c8] : memref<8x27xf32, #tpu.memory_space<vmem>>, vector<8x1xf32>
    %118 = vector.broadcast %117 : vector<8x1xf32> to vector<8x512xf32>
    %119 = arith.mulf %118, %110 : vector<8x512xf32>
    %c0_55 = arith.constant 0 : index
    %c136 = arith.constant 136 : index
    %120 = vector.load %arg10[%c0_55, %c136] : memref<8x768xf32, #tpu.memory_space<vmem>>, vector<8x512xf32>
    %c0_56 = arith.constant 0 : index
    %c15 = arith.constant 15 : index
    %121 = vector.load %arg4[%c0_56, %c15] : memref<8x27xf32, #tpu.memory_space<vmem>>, vector<8x1xf32>
    %122 = vector.broadcast %121 : vector<8x1xf32> to vector<8x512xf32>
    %123 = arith.mulf %122, %120 : vector<8x512xf32>
    %124 = arith.addf %113, %123 : vector<8x512xf32>
    %c0_57 = arith.constant 0 : index
    %c16 = arith.constant 16 : index
    %125 = vector.load %arg4[%c0_57, %c16] : memref<8x27xf32, #tpu.memory_space<vmem>>, vector<8x1xf32>
    %126 = vector.broadcast %125 : vector<8x1xf32> to vector<8x512xf32>
    %127 = arith.mulf %126, %120 : vector<8x512xf32>
    %128 = arith.addf %116, %127 : vector<8x512xf32>
    %c0_58 = arith.constant 0 : index
    %c17 = arith.constant 17 : index
    %129 = vector.load %arg4[%c0_58, %c17] : memref<8x27xf32, #tpu.memory_space<vmem>>, vector<8x1xf32>
    %130 = vector.broadcast %129 : vector<8x1xf32> to vector<8x512xf32>
    %131 = arith.mulf %130, %120 : vector<8x512xf32>
    %132 = arith.addf %119, %131 : vector<8x512xf32>
    %c0_59 = arith.constant 0 : index
    %c200 = arith.constant 200 : index
    %133 = vector.load %arg10[%c0_59, %c200] : memref<8x768xf32, #tpu.memory_space<vmem>>, vector<8x512xf32>
    %c0_60 = arith.constant 0 : index
    %c24 = arith.constant 24 : index
    %134 = vector.load %arg4[%c0_60, %c24] : memref<8x27xf32, #tpu.memory_space<vmem>>, vector<8x1xf32>
    %135 = vector.broadcast %134 : vector<8x1xf32> to vector<8x512xf32>
    %136 = arith.mulf %135, %133 : vector<8x512xf32>
    %137 = arith.addf %124, %136 : vector<8x512xf32>
    %c0_61 = arith.constant 0 : index
    %c25 = arith.constant 25 : index
    %138 = vector.load %arg4[%c0_61, %c25] : memref<8x27xf32, #tpu.memory_space<vmem>>, vector<8x1xf32>
    %139 = vector.broadcast %138 : vector<8x1xf32> to vector<8x512xf32>
    %140 = arith.mulf %139, %133 : vector<8x512xf32>
    %141 = arith.addf %128, %140 : vector<8x512xf32>
    %c0_62 = arith.constant 0 : index
    %c26 = arith.constant 26 : index
    %142 = vector.load %arg4[%c0_62, %c26] : memref<8x27xf32, #tpu.memory_space<vmem>>, vector<8x1xf32>
    %143 = vector.broadcast %142 : vector<8x1xf32> to vector<8x512xf32>
    %144 = arith.mulf %143, %133 : vector<8x512xf32>
    %145 = arith.addf %132, %144 : vector<8x512xf32>
    %c1_i32_63 = arith.constant 1 : i32
    %146 = tpu.dynamic_rotate %137 by %c1_i32_63 dim 1 : vector<8x512xf32>, i32 -> vector<8x512xf32>
    %c6_64 = arith.constant 6 : index
    %c0_65 = arith.constant 0 : index
    %147 = vector.load %arg8[%c6_64, %c0_65] : memref<9x512xf32, #tpu.memory_space<vmem>>, vector<1x512xf32>
    %148 = vector.broadcast %147 : vector<1x512xf32> to vector<8x512xf32>
    %149 = arith.mulf %146, %148 : vector<8x512xf32>
    %150 = arith.addf %109, %149 : vector<8x512xf32>
    %c7_66 = arith.constant 7 : index
    %c0_67 = arith.constant 0 : index
    %151 = vector.load %arg8[%c7_66, %c0_67] : memref<9x512xf32, #tpu.memory_space<vmem>>, vector<1x512xf32>
    %152 = vector.broadcast %151 : vector<1x512xf32> to vector<8x512xf32>
    %153 = arith.mulf %141, %152 : vector<8x512xf32>
    %154 = arith.addf %150, %153 : vector<8x512xf32>
    %c511_i32_68 = arith.constant 511 : i32
    %155 = tpu.dynamic_rotate %145 by %c511_i32_68 dim 1 : vector<8x512xf32>, i32 -> vector<8x512xf32>
    %c8_69 = arith.constant 8 : index
    %c0_70 = arith.constant 0 : index
    %156 = vector.load %arg8[%c8_69, %c0_70] : memref<9x512xf32, #tpu.memory_space<vmem>>, vector<1x512xf32>
    %157 = vector.broadcast %156 : vector<1x512xf32> to vector<8x512xf32>
    %158 = arith.mulf %155, %157 : vector<8x512xf32>
    %159 = arith.addf %154, %158 : vector<8x512xf32>
    %c0_71 = arith.constant 0 : index
    %c0_72 = arith.constant 0 : index
    %160 = vector.load %arg5[%c0_71, %c0_72] : memref<8x1xf32, #tpu.memory_space<vmem>>, vector<8x1xf32>
    %161 = vector.broadcast %160 : vector<8x1xf32> to vector<8x512xf32>
    %162 = arith.addf %159, %161 : vector<8x512xf32>
    %cst_73 = arith.constant 0.000000e+00 : f32
    %163 = vector.broadcast %cst_73 : f32 to vector<8x512xf32>
    %164 = arith.maximumf %162, %163 : vector<8x512xf32>
    %c0_74 = arith.constant 0 : index
    %c0_75 = arith.constant 0 : index
    %165 = vector.load %arg6[%c0_74, %c0_75] : memref<4x8xf32, #tpu.memory_space<vmem>>, vector<4x8xf32>
    %cst_76 = arith.constant dense<0.000000e+00> : vector<4x512xf32>
    %166 = tpu.matmul %165, %164, %cst_76 {dimension_numbers = #tpu.dot_dimension_numbers<[1], [0], [0], [1], [0, 0, 1, 1], [], []>} : vector<4x8xf32>, vector<8x512xf32>, vector<4x512xf32> -> vector<4x512xf32>
    %c0_77 = arith.constant 0 : index
    %c0_78 = arith.constant 0 : index
    %167 = vector.load %arg7[%c0_77, %c0_78] : memref<4x1xf32, #tpu.memory_space<vmem>>, vector<4x1xf32>
    %168 = vector.broadcast %167 : vector<4x1xf32> to vector<4x512xf32>
    %169 = arith.addf %166, %168 : vector<4x512xf32>
    %170 = arith.addf %169, %1 : vector<4x512xf32>
    %c0_79 = arith.constant 0 : index
    %c0_80 = arith.constant 0 : index
    %c0_81 = arith.constant 0 : index
    %171 = vector.load %arg9[%c0_79, %c0_80, %c0_81] : memref<1x4x512xf32, #tpu.memory_space<vmem>>, vector<1x4x512xf32>
    %172 = vector.shape_cast %171 : vector<1x4x512xf32> to vector<4x512xf32>
    %173 = vector.shape_cast %170 : vector<4x512xf32> to vector<1x4x512xf32>
    tpu.vector_store %arg9[%c0_79, %c0_80, %c0_81], %173 {strides = array<i32>} : memref<1x4x512xf32, #tpu.memory_space<vmem>>, vector<1x4x512xf32>,
    return
  }
  func.func @transform_0(%arg0: i32) -> (i32, i32, i32) {
    %c0_i32 = arith.constant 0 : i32
    %c0_i32_0 = arith.constant 0 : i32
    %c0_i32_1 = arith.constant 0 : i32
    return %arg0, %c0_i32, %c0_i32_0 : i32, i32, i32
  }
  func.func @transform_1(%arg0: i32) -> (i32, i32) {
    %c0_i32 = arith.constant 0 : i32
    %c0_i32_0 = arith.constant 0 : i32
    %c0_i32_1 = arith.constant 0 : i32
    return %c0_i32, %c0_i32_0 : i32, i32
  }
  func.func @transform_2(%arg0: i32) -> (i32, i32) {
    %c0_i32 = arith.constant 0 : i32
    %c0_i32_0 = arith.constant 0 : i32
    %c0_i32_1 = arith.constant 0 : i32
    return %c0_i32, %c0_i32_0 : i32, i32
  }
  func.func @transform_3(%arg0: i32) -> (i32, i32) {
    %c0_i32 = arith.constant 0 : i32
    %c0_i32_0 = arith.constant 0 : i32
    %c0_i32_1 = arith.constant 0 : i32
    return %c0_i32, %c0_i32_0 : i32, i32
  }
  func.func @transform_4(%arg0: i32) -> (i32, i32) {
    %c0_i32 = arith.constant 0 : i32
    %c0_i32_0 = arith.constant 0 : i32
    %c0_i32_1 = arith.constant 0 : i32
    return %c0_i32, %c0_i32_0 : i32, i32
  }
  func.func @transform_5(%arg0: i32) -> (i32, i32) {
    %c0_i32 = arith.constant 0 : i32
    %c0_i32_0 = arith.constant 0 : i32
    %c0_i32_1 = arith.constant 0 : i32
    return %c0_i32, %c0_i32_0 : i32, i32
  }
  func.func @transform_6(%arg0: i32) -> (i32, i32) {
    %c0_i32 = arith.constant 0 : i32
    %c0_i32_0 = arith.constant 0 : i32
    %c0_i32_1 = arith.constant 0 : i32
    return %c0_i32, %c0_i32_0 : i32, i32
  }
  func.func @transform_7(%arg0: i32) -> (i32, i32) {
    %c0_i32 = arith.constant 0 : i32
    %c0_i32_0 = arith.constant 0 : i32
    %c0_i32_1 = arith.constant 0 : i32
    return %c0_i32, %c0_i32_0 : i32, i32
  }
  func.func @transform_8(%arg0: i32) -> (i32, i32, i32) {
    %c0_i32 = arith.constant 0 : i32
    %c0_i32_0 = arith.constant 0 : i32
    %c0_i32_1 = arith.constant 0 : i32
    return %arg0, %c0_i32, %c0_i32_0 : i32, i32, i32
  }
}

</mosaic_0001>

<bundles_post_ra>
// kernel: tpu_custom_call.1
= control target key start
LH: loop header
LB: loop body
LE: loop exit
PB: predicated region body
PF: predicated region fallthrough
CT: control target
= control target key end

     0   :  { %13 = vsyncpa [#allocation4], 0  ;;  %s3271_s0 = inlined_call_operand.vmem [shape: f32[2,4,512], index: 0, kind: input, shape index: {}]   ;;  %s3272_s1 = inlined_call_operand.vmem [shape: f32[8,4], index: 1, kind: input, shape index: {}]   ;;  %s3273_s2 = inlined_call_operand.vmem [shape: f32[8,1], index: 2, kind: input, shape index: {}]   ;;  %s3274_s3 = inlined_call_operand.vmem [shape: f32[8,27], index: 3, kind: input, shape index: {}]   ;;  %s3275_s4 = inlined_call_operand.vmem [shape: f32[8,1], index: 4, kind: input, shape index: {}]   ;;  %s3276_s5 = inlined_call_operand.vmem [shape: f32[4,8], index: 5, kind: input, shape index: {}]   ;;  %s3277_s6 = inlined_call_operand.vmem [shape: f32[4,1], index: 6, kind: input, shape index: {}]   ;;  %s3278_s7 = inlined_call_operand.hbm [shape: f32[9,512], index: 7, kind: input, shape index: {}]   ;;  %s3279_s8 = inlined_call_operand.hbm [shape: f32[2,4,512], index: 8, kind: output, shape index: {}]  }
   0x1   :  { %14 = vsyncpa [#allocation5], 0 }
   0x2   :  { %16 = vsyncpa [#allocation5 + $0x1], 0  ;;  %s2192_s27 = smov 0   ;;  %s2194_s28 = smov 0  }
   0x3   :  { %s2196_s29 = smov 0   ;;  %s2198_s30 = smov 0  }
   0x4 LB: > { %s2213_s9 = sadd.s32 4294967295, %s2108_s30   ;;  %s1871_s10 = sadd.s32 4294967294, %s2108_s30   ;;  %s2108_s30 = sphi %s2198_s30, %s3367_s30   ;;  %s2104_s29 = sphi %s2196_s29, %s3366_s29   ;;  %s2100_s28 = sphi %s2194_s28, %s3365_s28   ;;  %s2096_s27 = sphi %s2192_s27, %s3364_s27  }
   0x5   : > { %s2217_s11 = sadd.s32 1, %s2108_s30   ;;  %s202_s12 = sadd.s32 1, %s2104_s29 }
   0x6   : > { %s199_s13 = ssub.s32 %s2108_s30, %s2217_s11  ;;  %p212_p0 = scmp.ne.s32.totalorder %s2104_s29, %s2100_s28 }
   0x7   : > { %p200_p1 = scmp.eq.s32.totalorder %s199_s13, 0  ;;  %p213_p2 = scmp.eq.s32.totalorder %s2213_s9, 1 }
   0x8   : > { %p218_p3 = scmp.ne.s32.totalorder %s2100_s28, %s2096_s27  ;;  %p219_p4 = scmp.eq.s32.totalorder %s1871_s10, 1 }
   0x9   : > { %s2228_s14 = scalar_select %p200_p1, %s2104_s29, %s202_s12  }
   0xa   : > { %p2230_p5 = por %p213_p2, %p212_p0  ;;  %p2234_p6 = por %p219_p4, %p218_p3 }
   0xb   : > { %p1872_p7 = scmp.ge.s32.totalorder %s2108_s30, 1  ;;  %p226_p8 = scmp.lt.s32.totalorder %s2108_s30, 3 }
   0xc   : > { %s3306_s15 = scalar_select %p2230_p5, 1, 0 }
   0xd   : > { %s3307_s16 = scalar_select %p2234_p6, 1, 0 }
   0xe   : > { %p3280_p9 = scmp.eq.s32.totalorder %s2213_s9, 0  ;;  %p2241_p10 = pnand %p1872_p7, %p226_p8 }
   0xf   : > { %s2110_s18 = smov [#allocation3]   ;;  %s2014_s23 = scalar_lea.hbm %s3278_s7, 1024 }
  0x10   : > { %s3308_s17 = scalar_select %p2241_p10, 1, 0 }
  0x11   : > { %s256_s19 = sshll.u32 %s2110_s18, 4  ;;  %p1901_p11 = pneg %p2241_p10  ;;  %s257_s19 = int_to_ptr.vmem [resolvable:$true] %s256_s19 }
  0x12   : > { %p2015_p13 = scmp.ne.s32.totalorder %s3278_s7, %s2014_s23  ;;  %p2021_p3 = scmp.lt.u32.totalorder %s2014_s23, %s3278_s7 }
  0x13   : > { %p2249_p12 = pnand %p3280_p9, %p1901_p11 }
  0x15   : > { %p2016_p0 = pneg %p2249_p12 }
  0x17   : > { %p2017_p1 = pnand %p2016_p0, %p2015_p13 }
  0x19   : > { %p2018_p2 = pneg %p2017_p1 }
  0x1b   : > { %p2023_p4 = pnand %p2021_p3, %p2018_p2 }
  0x1d   : > { %2026 = shalt.err (!%p2023_p4)
}
  0x1e   : > { %s2027_s12 = scalar_lea.vmem %s257_s19, 1024  ;;  %p2035_p9 = scmp.lt.s32.totalorder %s257_s19, %s257_s19 }
  0x1f   : > { %p2028_p7 = scmp.ne.s32.totalorder %s257_s19, %s2027_s12  ;;  %p2036_p6 = scmp.lt.s32.totalorder %s2027_s12, %s2027_s12 }
  0x21   : > { %p2030_p8 = pnand %p2028_p7, %p2016_p0  ;;  %p2037_p5 = por %p2036_p6, %p2035_p9 }
  0x23   : > { %p2031_p11 = pneg %p2030_p8 }
  0x25   : > { %p2038_p10 = pnand %p2037_p5, %p2031_p11 }
  0x27   : > { %2041 = shalt.err (!%p2038_p10)
}
  0x28   : > { %s2111_s13 = smov 512   ;;  %s2112_s18 = smov 32  }
  0x29   : > { %1904 = dma.hbm_to_vmem [thread:$0]  (!%p2249_p12), %s3278_s7, 1024, %s257_s19, [#allocation4], %s2111_s13, %s2111_s13, %s2112_s18  }
  0x2a   : > { %p3310_p13 = scmp.ne.s32.totalorder %s3308_s17, 0 }
  0x2c   : > { %280 = sbr.rel (%p3310_p13) target bundleno = 996 (0x3e4), region = 52 }
  0x33   : > { %p3311_p1 = scmp.eq.s32.totalorder %s2213_s9, 0 }
  0x35   : > { %2087 = dma.done.wait (%p3311_p1), [#allocation4], 1024   ;;  %p3312_p0 = pmov %p3311_p1 }
  0x36   : > { %p314_p5 = scmp.lt.s32.totalorder %s2213_s9, 1  ;;  %v2113_v0 = vmov 11   ;;  %v2114_v1 = vmov 0.0   ;;  %v2115_v2 = vmov 0   ;;  %v2286_v3 = vld [vmem:[%s3274_s3] sm:$0xff]  ;;  %vm336_vm0 = vcmask 1043456  }
  0x37   : > { %2089 = vsyncadd (%p3312_p0), [#allocation4], 4294966272  ;;  %1982 = vset.pattern.permute.xlu1 %v2113_v0  ;;  %409 = vmatprep.mubr.f32.mxu0 %v2114_v1  ;;  %v322_v8 = vld [vmem:[%s3273_s2] sm:$0xff]  ;;  %vm332_vm1 = vcmask 31744   ;;  %v2116_v10 = vmov 12   ;;  %v2117_v11 = vmov 9   ;;  %v3283_v23 = vlaneseq }
  0x38   : > { %s315_s20 = scalar_select %p314_p5, %s2213_s9, 1  ;;  %480 = vmatprep.mubr.f32.mxu1 %v2114_v1  ;;  %1980 = vset.pattern.permute.xlu0 %v2115_v2  ;;  %v321_v9 = vld [vmem:[%s3272_s1] sm:$0xff]  ;;  %v2118_v12 = vmov 14   ;;  %v2119_v13 = vmov 15   ;;  %v2120_v14 = vmov 17   ;;  %v2121_v15 = vmov 10  }
  0x39   : > { %609 = vperm.xlu1 %1982, %v2286_v3   ;;  %325 = vperm.xlu0 %1980, %v322_v8   ;;  %v2122_v16 = vmov 20   ;;  %v2123_v17 = vmov 2   ;;  %v2124_v18 = vmov 13   ;;  %v2125_v19 = vmov 18   ;;  %s2134_s21 = smov 56   ;;  %s2137_s22 = smov 72  }
  0x3a   : > { %s1893_s17 = sshll.u32 %s315_s20, 4  ;;  %v2126_v20 = vmov 6   ;;  %v2127_v21 = vmov 3   ;;  %v2128_v22 = vmov 16   ;;  %v2129_v24 = vmov 21   ;;  %v1602_v51 = vld [vmem:[%s3275_s4] sm:$0xff] }
  0x3b   : > { %s2281_s24 = scalar_lea.vmem %s3271_s0, %s1893_s17  ;;  %v735_v25 = vshrl.u32 %v3283_v23, 7  ;;  %v2130_v26 = vmov 26   ;;  %v2131_v28 = vmov 5   ;;  %v759_v29 = vld [vmem:[#allocation3 + $0x1] ss:$8 sm:$0xf] }
  0x3c   : > { %v319_v4 = vld [vmem:[%s2281_s24] sm:$0xff]  ;;  %v320_v5 = vld [vmem:[%s2281_s24 + $0x8] sm:$0xff]  ;;  %v2132_v30 = vmov 1   ;;  %v2133_v33 = vmov 23   ;;  %v2135_v36 = vmov 24   ;;  %v2136_v40 = vmov 8  }
  0x3d   : > { %v2291_v6 = vcombine.high %v319_v4, %v319_v4  ;;  %v2293_v7 = vcombine.high %v320_v5, %v320_v5  ;;  %1983 = vset.pattern.permute.xlu1 %v2116_v10  ;;  %1981 = vset.pattern.permute.xlu0 %v2117_v11  ;;  %v2321_v27 = vsub.s32 1, %v735_v25  ;;  %v2326_v32 = vsub.s32 3, %v735_v25  ;;  %v1470_v37 = vld [vmem:[#allocation3 + $0x7] ss:$8 sm:$0xf]  ;;  %s2143_s19 = smov 64  }
  0x3e   : > { %921 = vperm.xlu1 %1983, %v2286_v3   ;;  %532 = vperm.xlu0 %1981, %v2286_v3   ;;  %v2332_v35 = vsub.s32 0, %v735_v25  ;;  %v2337_v39 = vsub.s32 2, %v735_v25  ;;  %v2138_v42 = vmov 19   ;;  %v2139_v43 = vmov 4   ;;  %s2144_s23 = smov 1   ;;  %s2145_s25 = smov 127  }
  0x3f   : > { %3313 = vst [vmem:[#allocation9_spill] sm:$0xff] %v2291_v6  ;;  %3314 = vst [vmem:[#allocation10_spill] sm:$0xff] %v2293_v7  ;;  %1880 = vmatprep.subr.msk.mxu0 %vm336_vm0, %v2291_v6  ;;  %1883 = vmatprep.subr.msk.mxu1 %vm336_vm0, %v2293_v7  ;;  %v768_v31 = vrot.slane %v759_v29, %v2321_v27  ;;  %v776_v34 = vrot.slane %v759_v29, %v2326_v32  ;;  %v2140_v44 = vmov 22   ;;  %v2141_v47 = vmov 7   ;;  %s311_s18 = sand.u32 1, %s2100_s28   ;;  %p3362_p9 = scmp.ne.s32.totalorder %s3306_s15, 0 }
  0x40   : > { %1881 = vmatpush1.msk.msra.mxu0 %vm336_vm0, %v319_v4  ;;  %1884 = vmatpush1.msk.msra.mxu1 %vm336_vm0, %v320_v5  ;;  %3315 = vst [vmem:[#allocation11_spill] sm:$0xff] %v2321_v27  ;;  %3316 = vst [vmem:[#allocation12_spill] sm:$0xff] %v2326_v32  ;;  %v1475_v38 = vrot.slane %v1470_v37, %v2332_v35  ;;  %v1483_v41 = vrot.slane %v1470_v37, %v2337_v39  ;;  %v2142_v48 = vmov 25   ;;  %vm555_vm2 = vcmask 523264  }
  0x41   : > { %1882 = vmatmul.mubr.msk.f32.vlgmr.msra.gmra.mrb[0].mxu0 %vm332_vm1, %v321_v9  ;;  %1885 = vmatmul.mubr.msk.f32.vlgmr.msra.gmra.mrb[0].mxu1 %vm332_vm1, %v321_v9  ;;  %3317 = vst [vmem:[#allocation13_spill] sm:$0xff] %v2332_v35  ;;  %3318 = vst [vmem:[#allocation14_spill] sm:$0xff] %v2337_v39  ;;  %v764_v45 = vrot.slane %v759_v29, %v2332_v35  ;;  %v772_v46 = vrot.slane %v759_v29, %v2337_v39  ;;  %vm785_vm3 = vcmask 457728   ;;  %vm708_vm4 = vcmask 588800  }
  0x42   : > { %1762 = vmatprep.mubr.f32.mxu1 %v2114_v1  ;;  %1691 = vmatprep.mubr.f32.mxu0 %v2114_v1  ;;  %v1479_v49 = vrot.slane %v1470_v37, %v2321_v27  ;;  %v1487_v50 = vrot.slane %v1470_v37, %v2326_v32  ;;  %vm1623_vm7 = vcmask 64512  }
  0x43   : > { %1984 = vset.pattern.permute.xlu1 %v2118_v12  ;;  %1985 = vset.pattern.permute.xlu0 %v2119_v13 }
  0x44   : > { %987 = vperm.xlu1 %1984, %v2286_v3   ;;  %1248 = vperm.xlu0 %1985, %v2286_v3  }
  0x48   : > { %1986 = vset.pattern.permute.xlu1 %v2120_v14  ;;  %1988 = vset.pattern.permute.xlu0 %v2121_v15 }
  0x49   : > { %1324 = vperm.xlu1 %1986, %v2286_v3   ;;  %571 = vperm.xlu0 %1988, %v2286_v3  }
  0x4d   : > { %1987 = vset.pattern.permute.xlu1 %v2115_v2  ;;  %1991 = vset.pattern.permute.xlu0 %v2122_v16 }
  0x4e   : > { %505 = vperm.xlu1 %1987, %v2286_v3   ;;  %680 = vperm.xlu0 %1991, %v2286_v3  }
  0x52   : > { %1989 = vset.pattern.permute.xlu1 %v2123_v17  ;;  %1995 = vset.pattern.permute.xlu0 %v2124_v18 }
  0x53   : > { %523 = vperm.xlu1 %1989, %v2286_v3   ;;  %954 = vperm.xlu0 %1995, %v2286_v3  }
  0x57   : > { %1990 = vset.pattern.permute.xlu1 %v2125_v19  ;;  %1997 = vset.pattern.permute.xlu0 %v2126_v20 }
  0x58   : > { %652 = vperm.xlu1 %1990, %v2286_v3   ;;  %1221 = vperm.xlu0 %1997, %v2286_v3  }
  0x5c   : > { %1992 = vset.pattern.permute.xlu1 %v2127_v21  ;;  %1998 = vset.pattern.permute.xlu0 %v2128_v22 }
  0x5d   : > { %894 = vperm.xlu1 %1992, %v2286_v3   ;;  %1286 = vperm.xlu0 %1998, %v2286_v3  }
  0x61   : > { %1993 = vset.pattern.permute.xlu1 %v2129_v24  ;;  %2001 = vset.pattern.permute.xlu0 %v2130_v26 }
  0x62   : > { %1020 = vperm.xlu1 %1993, %v2286_v3   ;;  %1390 = vperm.xlu0 %2001, %v2286_v3  }
  0x66   : > { %1994 = vset.pattern.permute.xlu1 %v2131_v28  ;;  %2002 = vset.pattern.permute.xlu0 %v2132_v30 }
  0x67   : > { %912 = vperm.xlu1 %1994, %v2286_v3   ;;  %514 = vperm.xlu0 %2002, %v2286_v3  }
  0x6b   : > { %1996 = vset.pattern.permute.xlu1 %v2133_v33  ;;  %779 = vrot.lane.b32.xlu0 %v768_v31, %s2134_s21 }
  0x6c   : > { %1048 = vperm.xlu1 %1996, %v2286_v3   ;;  %2009 = vset.pattern.permute.xlu0 %v2115_v2 }
  0x6f   : > { %783 = vrot.lane.b32.xlu0 %v776_v34, %s2134_s21 }
  0x70   : > { %1999 = vset.pattern.permute.xlu1 %v2135_v36 }
  0x71   : > { %1362 = vperm.xlu1 %1999, %v2286_v3  }
  0x73   : > { %1488 = vrot.lane.b32.xlu0 %v1475_v38, %s2137_s22 }
  0x75   : > { %2000 = vset.pattern.permute.xlu1 %v2136_v40 }
  0x76   : > { %1239 = vperm.xlu1 %2000, %v2286_v3  }
  0x77   : > { %1492 = vrot.lane.b32.xlu0 %v1483_v41, %s2137_s22 }
  0x7a   : > { %2003 = vset.pattern.permute.xlu1 %v2138_v42 }
  0x7b   : > { %666 = vperm.xlu1 %2003, %v2286_v3  }
  0x7f   : > { %2004 = vset.pattern.permute.xlu1 %v2139_v43 }
  0x80   : > { %903 = vperm.xlu1 %2004, %v2286_v3  }
  0x84   : > { %2005 = vset.pattern.permute.xlu1 %v2140_v44 }
  0x85   : > { %1034 = vperm.xlu1 %2005, %v2286_v3  }
  0x89   : > { %777 = vrot.lane.b32.xlu1 %v764_v45, %s2134_s21 }
  0x8a   : > { %2006 = vset.pattern.permute.xlu1 %v2141_v47 }
  0x8d   : > { %781 = vrot.lane.b32.xlu1 %v772_v46, %s2134_s21 }
  0x91   : > { %1230 = vperm.xlu1 %2006, %v2286_v3  }
  0x95   : > { %2007 = vset.pattern.permute.xlu1 %v2142_v48 }
  0x96   : > { %1376 = vperm.xlu1 %2007, %v2286_v3  }
  0x9a   : > { %1490 = vrot.lane.b32.xlu1 %v1479_v49, %s2137_s22 }
  0x9b   : > { %2008 = vset.pattern.permute.xlu1 %v2115_v2 }
  0x9e   : > { %1494 = vrot.lane.b32.xlu1 %v1487_v50, %s2137_s22 }
  0xa2   : > { %1605 = vperm.xlu1 %2008, %v1602_v51  }
  0xb8   : > { %v2360_v52 = vpop.permute.xlu1 %609  ;;  %v2362_v53 = vpop.permute.xlu0 %325 }
  0xb9   : > { %v612_v54 = vmul.f32 0.0, %v2360_v52 }
  0xbb   : > { %622 = vrot.lane.b32.xlu1 %v612_v54, %s2143_s19 }
  0xbd   : > { %v2366_v55 = vpop.permute.xlu1 %921  ;;  %v2368_v56 = vpop.permute.xlu0 %532 }
  0xbe   : > { %v535_v57 = vmul.f32 0.0, %v2368_v56 }
  0xc0   : > { %545 = vrot.lane.b32.xlu0 %v535_v57, %s2143_s19 }
  0xc3   : > { %v2371_v58 = vpop.permute.xlu1 %987  ;;  %v2374_v59 = vpop.permute.xlu0 %1248 }
  0xc4   : > { %v1255_v60 = vmul.f32 0.0, %v2374_v59 }
  0xc6   : > { %1269 = vrot.lane.b32.xlu0 %v1255_v60, %s2143_s19 }
  0xc8   : > { %v2377_v61 = vpop.permute.xlu1 %1324  ;;  %v2381_v63 = vpop.permute.xlu0 %571 }
  0xc9   : > { %v1331_v62 = vmul.f32 0.0, %v2377_v61  ;;  %v574_v0 = vmul.f32 0.0, %v2381_v63 }
  0xcb   : > { %1345 = vrot.lane.b32.xlu1 %v1331_v62, %s2143_s19  ;;  %584 = vrot.lane.b32.xlu0 %v574_v0, %s2143_s19 }
  0xcd   : > { %v2386_v1 = vpop.permute.xlu0 %680  ;;  %v2396_v8 = vpop.permute.xlu1 %505 }
  0xce   : > { %v508_v27 = vmul.f32 0.0, %v2396_v8 }
  0xd2   : > { %v2388_v2 = vpop.permute.xlu0 %954  ;;  %v2408_v19 = vpop.permute.xlu1 %523 }
  0xd7   : > { %v2390_v3 = vpop.permute.xlu0 %1221  ;;  %v2418_v22 = vpop.permute.xlu1 %652 }
  0xdc   : > { %v2392_v4 = vpop.permute.xlu0 %1286  ;;  %v2430_v29 = vpop.permute.xlu1 %894 }
  0xdd   : > { %v1293_v5 = vmul.f32 0.0, %v2392_v4 }
  0xdf   : > { %1307 = vrot.lane.b32.xlu0 %v1293_v5, %s2143_s19 }
  0xe1   : > { %v2440_v33 = vpop.permute.xlu1 %1020 }
  0xe6   : > { %v2453_v41 = vpop.permute.xlu1 %912 }
  0xeb   : > { %v2466_v46 = vpop.permute.xlu1 %1048 }
 0x114   : > { %v411_v9 = vpop.f32.mrb[0].mxu0  ;;  %v482_v11 = vpop.f32.mrb[0].mxu1 }
 0x115   : > { %v412_v10 = vadd.f32 %v411_v9, %v2362_v53  ;;  %v413_v12 = vpop.f32.mrb[1].mxu0  ;;  %v483_v13 = vadd.f32 %v482_v11, %v2362_v53  ;;  %v484_v14 = vpop.f32.mrb[1].mxu1 }
 0x116   : > { %v414_v38 = vadd.f32 %v413_v12, %v2362_v53  ;;  %v485_v44 = vadd.f32 %v484_v14, %v2362_v53  ;;  %v2480_v53 = vpop.permute.xlu1 %1362  ;;  %v2527_v14 = vpop.permute.xlu0 %1390 }
 0x117   : > { %v2400_v15 = vmax.f32 %v412_v10, 0.0  ;;  %v2402_v16 = vmax.f32 %v483_v13, 0.0 }
 0x118   : > { %v2459_v43 = vmax.f32 %v414_v38, 0.0  ;;  %v2470_v48 = vmax.f32 %v485_v44, 0.0 }
 0x119   : > { %v536_v17 = vmul.f32 %v2368_v56, %v2400_v15  ;;  %v926_v18 = vmul.f32 %v2366_v55, %v2402_v16  ;;  %v538_v20 = vmul.f32 %v2368_v56, %v2402_v16  ;;  %v990_v21 = vmul.f32 %v2371_v58, %v2400_v15 }
 0x11a   : > { %v613_v24 = vmul.f32 %v2360_v52, %v2400_v15  ;;  %v992_v25 = vmul.f32 %v2371_v58, %v2402_v16  ;;  %v615_v26 = vmul.f32 %v2360_v52, %v2402_v16  ;;  %v1253_v28 = vmul.f32 %v2374_v59, %v2402_v16  ;;  %v2490_v60 = vpop.permute.xlu1 %1239 }
 0x11b   : > { %547 = vrot.lane.b32.xlu1 %v536_v17, %s2143_s19  ;;  %936 = vrot.lane.b32.xlu0 %v926_v18, %s2143_s19  ;;  %v924_v30 = vmul.f32 %v2366_v55, %v2400_v15  ;;  %v957_v31 = vmul.f32 %v2388_v2, %v2400_v15  ;;  %v1251_v34 = vmul.f32 %v2374_v59, %v2400_v15 }
 0x11c   : > { %v959_v36 = vmul.f32 %v2388_v2, %v2402_v16  ;;  %v1327_v37 = vmul.f32 %v2377_v61, %v2400_v15  ;;  %v1289_v40 = vmul.f32 %v2392_v4, %v2400_v15  ;;  %v1329_v42 = vmul.f32 %v2377_v61, %v2402_v16 }
 0x11d   : > { %v1291_v45 = vmul.f32 %v2392_v4, %v2402_v16  ;;  %v575_v47 = vmul.f32 %v2381_v63, %v2400_v15  ;;  %v537_v49 = vmul.f32 %v2368_v56, %v2459_v43  ;;  %v577_v50 = vmul.f32 %v2381_v63, %v2402_v16 }
 0x11e   : > { %v539_v51 = vmul.f32 %v2368_v56, %v2470_v48  ;;  %v925_v54 = vmul.f32 %v2366_v55, %v2459_v43  ;;  %v614_v57 = vmul.f32 %v2360_v52, %v2459_v43  ;;  %v927_v56 = vmul.f32 %v2366_v55, %v2470_v48  ;;  %v2502_v9 = vpop.permute.xlu1 %666 }
 0x11f   : > { %551 = vrot.lane.b32.xlu1 %v538_v20, %s2143_s19  ;;  %998 = vrot.lane.b32.xlu0 %v990_v21, %s2143_s19  ;;  %v616_v62 = vmul.f32 %v2360_v52, %v2470_v48  ;;  %v991_v0 = vmul.f32 %v2371_v58, %v2459_v43  ;;  %v1328_v5 = vmul.f32 %v2377_v61, %v2459_v43  ;;  %v2537_v20 = vpop.permute.xlu0 %514 }
 0x120   : > { %v993_v55 = vmul.f32 %v2371_v58, %v2470_v48  ;;  %v1330_v52 = vmul.f32 %v2377_v61, %v2470_v48  ;;  %v1252_v11 = vmul.f32 %v2374_v59, %v2459_v43  ;;  %v576_v12 = vmul.f32 %v2381_v63, %v2459_v43 }
 0x121   : > { %v1254_v58 = vmul.f32 %v2374_v59, %v2470_v48  ;;  %v578_v61 = vmul.f32 %v2381_v63, %v2470_v48  ;;  %v958_v17 = vmul.f32 %v2388_v2, %v2459_v43  ;;  %v960_v59 = vmul.f32 %v2388_v2, %v2470_v48 }
 0x122   : > { %v2512_v10 = vpop.permute.xlu1 %903  ;;  %v1290_v63 = vmul.f32 %v2392_v4, %v2459_v43  ;;  %v1393_v7 = vmul.f32 %v2527_v14, %v2400_v15 }
 0x123   : > { %624 = vrot.lane.b32.xlu1 %v613_v24, %s2143_s19  ;;  %1002 = vrot.lane.b32.xlu0 %v992_v25, %s2143_s19  ;;  %v2542_v21 = vpop.permute.xlu0 %779  ;;  %v1292_v25 = vmul.f32 %v2392_v4, %v2470_v48 }
 0x124   : > { %3320 = vst [vmem:[#allocation16_spill] sm:$0xff] %v2542_v21 }
 0x126   : > { %v2524_v13 = vpop.permute.xlu1 %1034 }
 0x127   : > { %628 = vrot.lane.b32.xlu1 %v615_v26, %s2143_s19  ;;  %1265 = vrot.lane.b32.xlu0 %v1253_v28, %s2143_s19  ;;  %v2550_v26 = vpop.permute.xlu0 %783 }
 0x128   : > { %3322 = vst [vmem:[#allocation18_spill] sm:$0xff] %v2550_v26 }
 0x12a   : > { %v2533_v18 = vpop.permute.xlu1 %777 }
 0x12b   : > { %932 = vrot.lane.b32.xlu1 %v924_v30, %s2143_s19  ;;  %965 = vrot.lane.b32.xlu0 %v957_v31, %s2143_s19  ;;  %3319 = vst [vmem:[#allocation15_spill] sm:$0xff] %v2533_v18  ;;  %v2554_v28 = vpop.permute.xlu0 %1488  ;;  %v509_v18 = vmul.f32 %v2396_v8, %v2400_v15 }
 0x12c   : > { %3323 = vst [vmem:[#allocation19_spill] sm:$0xff] %v2554_v28  ;;  %v658_v28 = vmul.f32 %v2418_v22, %v2470_v48 }
 0x12e   : > { %v2544_v24 = vpop.permute.xlu1 %781 }
 0x12f   : > { %1261 = vrot.lane.b32.xlu1 %v1251_v34, %s2143_s19  ;;  %969 = vrot.lane.b32.xlu0 %v959_v36, %s2143_s19  ;;  %3321 = vst [vmem:[#allocation17_spill] sm:$0xff] %v2544_v24  ;;  %v2558_v31 = vpop.permute.xlu0 %1492 }
 0x130   : > { %3325 = vst [vmem:[#allocation21_spill] sm:$0xff] %v2558_v31  ;;  %v669_v31 = vmul.f32 %v2502_v9, %v2400_v15 }
 0x132   : > { %v2552_v2 = vpop.permute.xlu1 %1230 }
 0x133   : > { %1337 = vrot.lane.b32.xlu1 %v1327_v37, %s2143_s19  ;;  %1299 = vrot.lane.b32.xlu0 %v1289_v40, %s2143_s19  ;;  %v546_v36 = vpop.permute.xlu0 %545  ;;  %v1233_v23 = vmul.f32 0.0, %v2552_v2 }
 0x136   : > { %v2556_v30 = vpop.permute.xlu1 %1376 }
 0x137   : > { %1341 = vrot.lane.b32.xlu1 %v1329_v42, %s2143_s19  ;;  %1303 = vrot.lane.b32.xlu0 %v1291_v45, %s2143_s19  ;;  %3324 = vst [vmem:[#allocation20_spill] sm:$0xff] %v2556_v30 }
 0x138   : > { %v2564_v38 = vpop.permute.xlu0 %1269 }
 0x139   : > { %3328 = vst [vmem:[#allocation24_spill] sm:$0xff] %v2564_v38 }
 0x13a   : > { %v2560_v34 = vpop.permute.xlu1 %1490 }
 0x13b   : > { %586 = vrot.lane.b32.xlu1 %v575_v47, %s2143_s19  ;;  %549 = vrot.lane.b32.xlu0 %v537_v49, %s2143_s19  ;;  %3326 = vst [vmem:[#allocation22_spill] sm:$0xff] %v2560_v34  ;;  %v655_v34 = vmul.f32 %v2418_v22, %v2400_v15 }
 0x13d   : > { %v2568_v40 = vpop.permute.xlu0 %584 }
 0x13e   : > { %v2562_v37 = vpop.permute.xlu1 %1494 }
 0x13f   : > { %590 = vrot.lane.b32.xlu1 %v577_v50, %s2143_s19  ;;  %553 = vrot.lane.b32.xlu0 %v539_v51, %s2143_s19  ;;  %3327 = vst [vmem:[#allocation23_spill] sm:$0xff] %v2562_v37  ;;  %v915_v50 = vmul.f32 0.0, %v2453_v41 }
 0x142   : > { %v2566_v4 = vpop.permute.xlu1 %1605 }
 0x143   : > { %934 = vrot.lane.b32.xlu1 %v925_v54, %s2143_s19  ;;  %626 = vrot.lane.b32.xlu0 %v614_v57, %s2143_s19  ;;  %3329 = vst [vmem:[#allocation25_spill] sm:$0xff] %v2566_v4 }
 0x146   : > { %v2570_v42 = vpop.permute.xlu1 %622 }
 0x147   : > { %938 = vrot.lane.b32.xlu1 %v927_v56, %s2143_s19  ;;  %630 = vrot.lane.b32.xlu0 %v616_v62, %s2143_s19  ;;  %v1051_v56 = vmul.f32 %v2466_v46, %v2400_v15 }
 0x14a   : > { %v2572_v44 = vpop.permute.xlu1 %1345 }
 0x14b   : > { %1000 = vrot.lane.b32.xlu1 %v991_v0, %s2143_s19  ;;  %1339 = vrot.lane.b32.xlu0 %v1328_v5, %s2143_s19  ;;  %3330 = vst [vmem:[#allocation26_spill] sm:$0xff] %v2572_v44 }
 0x14f   : > { %1004 = vrot.lane.b32.xlu1 %v993_v55, %s2143_s19  ;;  %1343 = vrot.lane.b32.xlu0 %v1330_v52, %s2143_s19 }
 0x151   : > { %v2574_v45 = vpop.permute.xlu0 %1307 }
 0x152   : > { %3331 = vst [vmem:[#allocation27_spill] sm:$0xff] %v2574_v45  ;;  %v656_v45 = vmul.f32 %v2418_v22, %v2459_v43 }
 0x153   : > { %1263 = vrot.lane.b32.xlu1 %v1252_v11, %s2143_s19  ;;  %588 = vrot.lane.b32.xlu0 %v576_v12, %s2143_s19  ;;  %v897_v11 = vmul.f32 0.0, %v2430_v29 }
 0x157   : > { %1267 = vrot.lane.b32.xlu1 %v1254_v58, %s2143_s19  ;;  %592 = vrot.lane.b32.xlu0 %v578_v61, %s2143_s19 }
 0x15b   : > { %967 = vrot.lane.b32.xlu1 %v958_v17, %s2143_s19  ;;  %v1023_v17 = vmul.f32 %v2440_v33, %v2400_v15 }
 0x15f   : > { %971 = vrot.lane.b32.xlu1 %v960_v59, %s2143_s19  ;;  %v1224_v59 = vmul.f32 0.0, %v2390_v3 }
 0x163   : > { %1301 = vrot.lane.b32.xlu1 %v1290_v63, %s2143_s19 }
 0x167   : > { %1305 = vrot.lane.b32.xlu1 %v1292_v25, %s2143_s19 }
 0x18d   : > { %v2576_v47 = vpop.permute.xlu1 %547  ;;  %v2578_v49 = vpop.permute.xlu0 %936 }
 0x18e   : > { %v556_v32 = vsel %vm555_vm2, %v546_v36, %v2576_v47  ;;  %v659_v36 = vmul.f32 0.0, %v2418_v22 }
 0x191   : > { %v2581_v51 = vpop.permute.xlu1 %551  ;;  %v2583_v54 = vpop.permute.xlu0 %998 }
 0x192   : > { %v1014_v57 = vadd.f32 %v2583_v54, %v915_v50 }
 0x194   : > { %v1056_v0 = vadd.f32 %v1051_v56, %v1014_v57  ;;  %v1365_v57 = vmul.f32 %v2480_v53, %v2400_v15 }
 0x195   : > { %v2588_v62 = vpop.permute.xlu1 %624  ;;  %v2590_v5 = vpop.permute.xlu0 %1002 }
 0x196   : > { %1159 = vrot.lane.b32.xlu1 %v1056_v0, %s2143_s19 }
 0x199   : > { %v2593_v55 = vpop.permute.xlu1 %628  ;;  %v2595_v52 = vpop.permute.xlu0 %1265 }
 0x19d   : > { %v2598_v12 = vpop.permute.xlu1 %932  ;;  %v2600_v58 = vpop.permute.xlu0 %965 }
 0x19e   : > { %v948_v61 = vadd.f32 %v2598_v12, %v897_v11  ;;  %v1242_v11 = vmul.f32 0.0, %v2490_v60 }
 0x1a0   : > { %v1028_v63 = vadd.f32 %v1023_v17, %v948_v61  ;;  %v906_v61 = vmul.f32 0.0, %v2512_v10 }
 0x1a1   : > { %v2606_v25 = vpop.permute.xlu1 %1261  ;;  %v2608_v50 = vpop.permute.xlu0 %969 }
 0x1a2   : > { %v1280_v56 = vadd.f32 %v2606_v25, %v1224_v59  ;;  %1066 = vrot.lane.b32.xlu0 %v1028_v63, %s2143_s19  ;;  %v1379_v59 = vmul.f32 %v2556_v30, %v2400_v15 }
 0x1a4   : > { %v1370_v0 = vadd.f32 %v1365_v57, %v1280_v56  ;;  %v981_v57 = vadd.f32 %v2600_v58, %v906_v61  ;;  %v2650_v61 = vmul.f32 0.0, %v2466_v46 }
 0x1a5   : > { %v2616_v6 = vpop.permute.xlu1 %1337  ;;  %v2619_v17 = vpop.permute.xlu0 %1299 }
 0x1a6   : > { %v1356_v4 = vadd.f32 %v2616_v6, %v1242_v11  ;;  %1408 = vrot.lane.b32.xlu1 %v1370_v0, %s2134_s21  ;;  %v1318_v63 = vadd.f32 %v2619_v17, %v1233_v23  ;;  %v1037_v0 = vmul.f32 %v2524_v13, %v2400_v15  ;;  %v2642_v23 = vmul.f32 0.0, %v2386_v1 }
 0x1a8   : > { %v1398_v56 = vadd.f32 %v1393_v7, %v1356_v4  ;;  %v2631_v39 = vadd.f32 %v1379_v59, %v1318_v63  ;;  %v526_v7 = vmul.f32 0.0, %v2408_v19  ;;  %v2647_v4 = vmul.f32 0.0, %v2440_v33 }
 0x1a9   : > { %v2633_v35 = vpop.permute.xlu1 %1341  ;;  %v2638_v11 = vpop.permute.xlu0 %1303  ;;  %v565_v59 = vadd.f32 %v556_v32, %v508_v27  ;;  %v1042_v63 = vadd.f32 %v1037_v0, %v981_v57  ;;  %v511_v27 = vmul.f32 %v2396_v8, %v2402_v16  ;;  %v512_v0 = vmul.f32 %v2396_v8, %v2470_v48 }
 0x1aa   : > { %3332 = vst [vmem:[#allocation28_spill] sm:$0xff] %v2631_v39  ;;  %3333 = vst [vmem:[#allocation29_spill] sm:$0xff] %v2638_v11  ;;  %1541 = vrot.lane.b32.xlu0 %v1398_v56, %s2134_s21  ;;  %v510_v39 = vmul.f32 %v2396_v8, %v2459_v43  ;;  %v517_v56 = vmul.f32 0.0, %v2537_v20  ;;  %v657_v8 = vmul.f32 %v2418_v22, %v2402_v16 }
 0x1ab   : > { %v660_v44 = vadd.f32 %v655_v34, %v565_v59  ;;  %v530_v59 = vmul.f32 %v2408_v19, %v2470_v48 }
 0x1ad   : > { %v2661_v37 = vpop.permute.xlu1 %586  ;;  %v550_v32 = vpop.permute.xlu0 %549 }
 0x1ae   : > { %v594_v57 = vsel %vm555_vm2, %v2568_v40, %v2661_v37  ;;  %1132 = vrot.lane.b32.xlu0 %v1042_v63, %s2143_s19  ;;  %v557_v21 = vsel %vm555_vm2, %v2576_v47, %v550_v32  ;;  %v558_v24 = vsel %vm555_vm2, %v550_v32, %v2581_v51  ;;  %v528_v40 = vmul.f32 %v2408_v19, %v2459_v43 }
 0x1af   : > { %v603_v38 = vadd.f32 %v594_v57, %v517_v56  ;;  %v566_v63 = vadd.f32 %v557_v21, %v509_v18  ;;  %v567_v26 = vadd.f32 %v558_v24, %v510_v39  ;;  %v684_v47 = vmul.f32 %v2386_v1, %v2459_v43 }
 0x1b0   : > { %v527_v32 = vmul.f32 %v2408_v19, %v2400_v15  ;;  %v898_v56 = vmul.f32 %v2430_v29, %v2400_v15  ;;  %v632_v39 = vsel %vm555_vm2, %v2570_v42, %v2588_v62  ;;  %v899_v21 = vmul.f32 %v2430_v29, %v2459_v43 }
 0x1b1   : > { %v2683_v30 = vadd.f32 %v669_v31, %v603_v38  ;;  %v2685_v11 = vpop.permute.xlu1 %590  ;;  %v2696_v18 = vadd.f32 %v656_v45, %v566_v63  ;;  %v554_v22 = vpop.permute.xlu0 %553  ;;  %v2701_v24 = vadd.f32 %v657_v8, %v567_v26  ;;  %v1024_v38 = vmul.f32 %v2440_v33, %v2459_v43 }
 0x1b2   : > { %698 = vrot.lane.b32.xlu0 %v660_v44, %s2137_s22  ;;  %v559_v31 = vsel %vm555_vm2, %v2581_v51, %v554_v22  ;;  %v569_v34 = vadd.f32 %v554_v22, %v512_v0  ;;  %v529_v42 = vmul.f32 %v2408_v19, %v2402_v16  ;;  %v686_v44 = vmul.f32 %v2386_v1, %v2470_v48 }
 0x1b3   : > { %3334 = vst [vmem:[#allocation30_spill] sm:$0xff] %v2683_v30  ;;  %3335 = vst [vmem:[#allocation31_spill] sm:$0xff] %v2696_v18  ;;  %v568_v45 = vadd.f32 %v559_v31, %v511_v27  ;;  %v900_v26 = vmul.f32 %v2430_v29, %v2402_v16  ;;  %v641_v57 = vadd.f32 %v632_v39, %v526_v7 }
 0x1b4   : > { %v664_v63 = vadd.f32 %v659_v36, %v569_v34  ;;  %v901_v0 = vmul.f32 %v2430_v29, %v2470_v48  ;;  %v683_v8 = vmul.f32 %v2386_v1, %v2400_v15  ;;  %v1025_v7 = vmul.f32 %v2440_v33, %v2402_v16 }
 0x1b5   : > { %v935_v51 = vpop.permute.xlu1 %934  ;;  %v2719_v22 = vadd.f32 %v658_v28, %v568_v45  ;;  %v627_v27 = vpop.permute.xlu0 %626 }
 0x1b6   : > { %v940_v19 = vsel %vm555_vm2, %v2598_v12, %v935_v51  ;;  %v941_v31 = vsel %vm555_vm2, %v935_v51, %v2578_v49  ;;  %v633_v36 = vsel %vm555_vm2, %v2588_v62, %v627_v27  ;;  %v634_v29 = vsel %vm555_vm2, %v627_v27, %v2593_v55  ;;  %706 = vrot.lane.b32.xlu0 %v664_v63, %s2137_s22 }
 0x1b7   : > { %3336 = vst [vmem:[#allocation32_spill] sm:$0xff] %v2719_v22  ;;  %v949_v39 = vadd.f32 %v940_v19, %v898_v56  ;;  %v950_v34 = vadd.f32 %v941_v31, %v899_v21  ;;  %v642_v28 = vadd.f32 %v633_v36, %v527_v32  ;;  %v643_v45 = vadd.f32 %v634_v29, %v528_v40 }
 0x1b8   : > { %v1026_v12 = vmul.f32 %v2440_v33, %v2470_v48  ;;  %v685_v51 = vmul.f32 %v2386_v1, %v2402_v16  ;;  %v688_v18 = vadd.f32 %v683_v8, %v641_v57  ;;  %v1243_v62 = vmul.f32 %v2490_v60, %v2400_v15 }
 0x1b9   : > { %v2736_v30 = vadd.f32 %v1024_v38, %v949_v39  ;;  %v939_v22 = vpop.permute.xlu1 %938  ;;  %v2740_v27 = vadd.f32 %v1025_v7, %v950_v34  ;;  %v2742_v56 = vadd.f32 %v684_v47, %v642_v28  ;;  %v631_v21 = vpop.permute.xlu0 %630  ;;  %v1244_v33 = vmul.f32 %v2490_v60, %v2459_v43 }
 0x1ba   : > { %v942_v40 = vsel %vm555_vm2, %v2578_v49, %v939_v22  ;;  %v2748_v32 = vadd.f32 %v685_v51, %v643_v45  ;;  %v635_v1 = vsel %vm555_vm2, %v2593_v55, %v631_v21  ;;  %v645_v38 = vadd.f32 %v631_v21, %v530_v59  ;;  %831 = vrot.lane.b32.xlu0 %v688_v18, %s2137_s22 }
 0x1bb   : > { %v951_v57 = vadd.f32 %v942_v40, %v900_v26  ;;  %v1394_v47 = vmul.f32 %v2527_v14, %v2459_v43  ;;  %v644_v63 = vadd.f32 %v635_v1, %v529_v42  ;;  %v1395_v8 = vmul.f32 %v2527_v14, %v2402_v16 }
 0x1bc   : > { %v916_v49 = vmul.f32 %v2453_v41, %v2400_v15  ;;  %v917_v19 = vmul.f32 %v2453_v41, %v2459_v43  ;;  %v692_v31 = vadd.f32 %v2642_v23, %v645_v38  ;;  %v952_v55 = vadd.f32 %v939_v22, %v901_v0 }
 0x1bd   : > { %v2762_v59 = vadd.f32 %v1026_v12, %v951_v57  ;;  %v1053_v18 = vmul.f32 %v2466_v46, %v2402_v16  ;;  %v1001_v26 = vpop.permute.xlu1 %1000  ;;  %v2766_v7 = vadd.f32 %v686_v44, %v644_v63  ;;  %v1340_v42 = vpop.permute.xlu0 %1339  ;;  %v1052_v39 = vmul.f32 %v2466_v46, %v2459_v43 }
 0x1be   : > { %v1006_v36 = vsel %vm555_vm2, %v2583_v54, %v1001_v26  ;;  %v1007_v29 = vsel %vm555_vm2, %v1001_v26, %v2590_v5  ;;  %v1347_v23 = vsel %vm555_vm2, %v2616_v6, %v1340_v42  ;;  %v1348_v0 = vsel %vm555_vm2, %v1340_v42, %v2633_v35  ;;  %839 = vrot.lane.b32.xlu0 %v692_v31, %s2137_s22 }
 0x1bf   : > { %v1015_v22 = vadd.f32 %v1006_v36, %v916_v49  ;;  %v1016_v34 = vadd.f32 %v1007_v29, %v917_v19  ;;  %v1357_v44 = vadd.f32 %v1347_v23, %v1243_v62  ;;  %v1358_v28 = vadd.f32 %v1348_v0, %v1244_v33 }
 0x1c0   : > { %v1245_v54 = vmul.f32 %v2490_v60, %v2402_v16  ;;  %v919_v45 = vmul.f32 %v2453_v41, %v2470_v48  ;;  %v1032_v12 = vadd.f32 %v2647_v4, %v952_v55  ;;  %v918_v6 = vmul.f32 %v2453_v41, %v2402_v16 }
 0x1c1   : > { %v2784_v51 = vadd.f32 %v1053_v18, %v1016_v34  ;;  %v1005_v21 = vpop.permute.xlu1 %1004  ;;  %v2788_v40 = vadd.f32 %v1052_v39, %v1015_v22  ;;  %v2790_v1 = vadd.f32 %v1394_v47, %v1357_v44  ;;  %v2792_v62 = vadd.f32 %v1395_v8, %v1358_v28  ;;  %v2794_v33 = vpop.permute.xlu0 %1343 }
 0x1c2   : > { %v1008_v38 = vsel %vm555_vm2, %v2590_v5, %v1005_v21  ;;  %v1018_v57 = vadd.f32 %v1005_v21, %v919_v45  ;;  %v1396_v4 = vmul.f32 %v2527_v14, %v2470_v48  ;;  %v1349_v41 = vsel %vm555_vm2, %v2633_v35, %v2794_v33  ;;  %1074 = vrot.lane.b32.xlu0 %v1032_v12, %s2143_s19 }
 0x1c3   : > { %v1017_v63 = vadd.f32 %v1008_v38, %v918_v6  ;;  %v1054_v47 = vmul.f32 %v2466_v46, %v2470_v48  ;;  %v1359_v8 = vadd.f32 %v1349_v41, %v1245_v54  ;;  %v519_v5 = vmul.f32 %v2537_v20, %v2459_v43 }
 0x1c4   : > { %v1060_v49 = vadd.f32 %v2650_v61, %v1018_v57  ;;  %v518_v19 = vmul.f32 %v2537_v20, %v2400_v15  ;;  %v1225_v31 = vmul.f32 %v2390_v3, %v2400_v15  ;;  %v1226_v35 = vmul.f32 %v2390_v3, %v2459_v43 }
 0x1c5   : > { %v1367_v55 = vmul.f32 %v2480_v53, %v2402_v16  ;;  %v1264_v18 = vpop.permute.xlu1 %1263  ;;  %v2817_v46 = vadd.f32 %v1054_v47, %v1017_v63  ;;  %v2819_v26 = vadd.f32 %v1396_v4, %v1359_v8  ;;  %v589_v61 = vpop.permute.xlu0 %588  ;;  %v1366_v29 = vmul.f32 %v2480_v53, %v2459_v43 }
 0x1c6   : > { %v1271_v42 = vsel %vm555_vm2, %v2606_v25, %v1264_v18  ;;  %v1272_v36 = vsel %vm555_vm2, %v1264_v18, %v2595_v52  ;;  %1167 = vrot.lane.b32.xlu1 %v1060_v49, %s2143_s19  ;;  %v595_v39 = vsel %vm555_vm2, %v2661_v37, %v589_v61  ;;  %v596_v23 = vsel %vm555_vm2, %v589_v61, %v2685_v11 }
 0x1c7   : > { %v1281_v0 = vadd.f32 %v1271_v42, %v1225_v31  ;;  %v1282_v22 = vadd.f32 %v1272_v36, %v1226_v35  ;;  %702 = vrot.lane.b32.xlu0 %v2701_v24, %s2137_s22  ;;  %v670_v25 = vmul.f32 %v2502_v9, %v2459_v43  ;;  %v671_v34 = vmul.f32 %v2502_v9, %v2402_v16 }
 0x1c8   : > { %v604_v44 = vadd.f32 %v595_v39, %v518_v19  ;;  %v605_v28 = vadd.f32 %v596_v23, %v519_v5  ;;  %v1227_v37 = vmul.f32 %v2390_v3, %v2402_v16  ;;  %v520_v24 = vmul.f32 %v2537_v20, %v2402_v16 }
 0x1c9   : > { %v2838_v54 = vadd.f32 %v1367_v55, %v1282_v22  ;;  %v2842_v45 = vpop.permute.xlu1 %1267  ;;  %v1371_v12 = vadd.f32 %v1366_v29, %v1281_v0  ;;  %v2850_v38 = vpop.permute.xlu0 %592  ;;  %v1368_v63 = vmul.f32 %v2480_v53, %v2470_v48  ;;  %v672_v47 = vmul.f32 %v2502_v9, %v2470_v48 }
 0x1ca   : > { %v2844_v6 = vadd.f32 %v670_v25, %v604_v44  ;;  %v2846_v21 = vadd.f32 %v671_v34, %v605_v28  ;;  %v1273_v57 = vsel %vm555_vm2, %v2595_v52, %v2842_v45  ;;  %v597_v4 = vsel %vm555_vm2, %v2685_v11, %v2850_v38 }
 0x1cb   : > { %v1283_v41 = vadd.f32 %v1273_v57, %v1227_v37  ;;  %835 = vrot.lane.b32.xlu0 %v2748_v32, %s2137_s22  ;;  %v606_v8 = vadd.f32 %v597_v4, %v520_v24  ;;  %v907_v49 = vmul.f32 %v2512_v10, %v2400_v15  ;;  %v908_v52 = vmul.f32 %v2512_v10, %v2459_v43  ;;  %v3337_v24 = vld [vmem:[#allocation29_spill] sm:$0xff] }
 0x1cc   : > { %v1038_v35 = vmul.f32 %v2524_v13, %v2459_v43  ;;  %v1039_v55 = vmul.f32 %v2524_v13, %v2402_v16  ;;  %v910_v42 = vmul.f32 %v2512_v10, %v2470_v48  ;;  %v1041_v23 = vmul.f32 0.0, %v2524_v13 }
 0x1cd   : > { %v968_v5 = vpop.permute.xlu1 %967  ;;  %v1373_v19 = vadd.f32 %v1368_v63, %v1283_v41  ;;  %v2868_v11 = vadd.f32 %v672_v47, %v606_v8  ;;  %v1040_v25 = vmul.f32 %v2524_v13, %v2470_v48  ;;  %v1234_v28 = vmul.f32 %v2552_v2, %v2400_v15  ;;  %v3338_v13 = vld [vmem:[#allocation20_spill] sm:$0xff] }
 0x1ce   : > { %v973_v32 = vsel %vm555_vm2, %v2600_v58, %v968_v5  ;;  %v974_v31 = vsel %vm555_vm2, %v968_v5, %v2608_v50  ;;  %v909_v58 = vmul.f32 %v2512_v10, %v2402_v16  ;;  %v1235_v10 = vmul.f32 %v2552_v2, %v2459_v43 }
 0x1cf   : > { %v982_v18 = vadd.f32 %v973_v32, %v907_v49  ;;  %v983_v61 = vadd.f32 %v974_v31, %v908_v52  ;;  %1070 = vrot.lane.b32.xlu0 %v2740_v27, %s2143_s19  ;;  %v1381_v4 = vmul.f32 %v3338_v13, %v2402_v16  ;;  %v1382_v52 = vmul.f32 %v3338_v13, %v2470_v48  ;;  %v3340_v32 = vld [vmem:[#allocation26_spill] sm:$0xff] }
 0x1d0   : > { %v1350_v31 = vsel %vm555_vm2, %v2794_v33, %v3340_v32  ;;  %v521_v33 = vmul.f32 %v2537_v20, %v2470_v48  ;;  %v3343_v20 = vld [vmem:[#allocation24_spill] sm:$0xff] }
 0x1d1   : > { %v1043_v36 = vadd.f32 %v1038_v35, %v982_v18  ;;  %v2882_v29 = vadd.f32 %v1039_v55, %v983_v61  ;;  %v972_v39 = vpop.permute.xlu1 %971  ;;  %v1246_v35 = vmul.f32 %v2490_v60, %v2470_v48  ;;  %v1397_v18 = vmul.f32 0.0, %v2527_v14 }
 0x1d2   : > { %v975_v0 = vsel %vm555_vm2, %v2608_v50, %v972_v39  ;;  %v985_v22 = vadd.f32 %v972_v39, %v910_v42  ;;  %v607_v60 = vadd.f32 %v2850_v38, %v521_v33  ;;  %v1228_v38 = vmul.f32 %v2390_v3, %v2470_v48  ;;  %v3346_v3 = vld [vmem:[#allocation22_spill] sm:$0xff] }
 0x1d3   : > { %v984_v27 = vadd.f32 %v975_v0, %v909_v58  ;;  %1161 = vrot.lane.b32.xlu0 %v2788_v40, %s2143_s19  ;;  %v1380_v40 = vmul.f32 %v3338_v13, %v2459_v43  ;;  %v3339_v43 = vld [vmem:[#allocation31_spill] sm:$0xff]  ;;  %v1360_v55 = vadd.f32 %v1350_v31, %v1246_v35  ;;  %v3349_v0 = vld [vmem:[#allocation21_spill] sm:$0xff] }
 0x1d4   : > { %v1046_v34 = vadd.f32 %v1041_v23, %v985_v22  ;;  %v3348_v23 = vld [vmem:[#allocation23_spill] sm:$0xff] }
 0x1d5   : > { %v1045_v44 = vadd.f32 %v1040_v25, %v984_v27  ;;  %v1302_v37 = vpop.permute.xlu1 %1301  ;;  %v3351_v22 = vld [vmem:[#allocation15_spill] sm:$0xff] }
 0x1d6   : > { %v1309_v50 = vsel %vm555_vm2, %v2619_v17, %v1302_v37  ;;  %v1310_v57 = vsel %vm555_vm2, %v1302_v37, %v3337_v24  ;;  %1140 = vrot.lane.b32.xlu1 %v1046_v34, %s2143_s19  ;;  %v1236_v17 = vmul.f32 %v2552_v2, %v2402_v16  ;;  %v3341_v16 = vld [vmem:[#allocation32_spill] sm:$0xff]  ;;  %v1383_v37 = vmul.f32 0.0, %v3338_v13 }
 0x1d7   : > { %v1319_v41 = vadd.f32 %v1309_v50, %v1234_v28  ;;  %v1320_v15 = vadd.f32 %v1310_v57, %v1235_v10  ;;  %1165 = vrot.lane.b32.xlu0 %v2817_v46, %s2143_s19 }
 0x1d9   : > { %v1385_v63 = vadd.f32 %v1380_v40, %v1319_v41  ;;  %v2908_v47 = vadd.f32 %v1381_v4, %v1320_v15  ;;  %v1306_v8 = vpop.permute.xlu1 %1305 }
 0x1da   : > { %v1311_v49 = vsel %vm555_vm2, %v3337_v24, %v1306_v8  ;;  %700 = vrot.lane.b32.xlu1 %v3339_v43, %s2137_s22 }
 0x1db   : > { %v1321_v5 = vadd.f32 %v1311_v49, %v1236_v17  ;;  %1410 = vrot.lane.b32.xlu0 %v1371_v12, %s2134_s21  ;;  %v1402_v12 = vadd.f32 %v1397_v18, %v1360_v55 }
 0x1dd   : > { %v1387_v46 = vadd.f32 %v1382_v52, %v1321_v5 }
 0x1de   : > { %704 = vrot.lane.b32.xlu1 %v3341_v16, %s2137_s22 }
 0x1df   : > { %1414 = vrot.lane.b32.xlu0 %v1373_v19, %s2134_s21  ;;  %v1274_v19 = vsel %vm555_vm2, %v2842_v45, %v3343_v20 }
 0x1e0   : > { %v1284_v61 = vadd.f32 %v1274_v19, %v1228_v38 }
 0x1e2   : > { %833 = vrot.lane.b32.xlu1 %v2742_v56, %s2137_s22  ;;  %v673_v56 = vmul.f32 0.0, %v2502_v9  ;;  %v3344_v9 = vld [vmem:[#allocation17_spill] sm:$0xff] }
 0x1e3   : > { %1545 = vrot.lane.b32.xlu0 %v2792_v62, %s2134_s21 }
 0x1e4   : > { %v678_v14 = vadd.f32 %v673_v56, %v607_v60 }
 0x1e6   : > { %837 = vrot.lane.b32.xlu1 %v2766_v7, %s2137_s22  ;;  %v3342_v7 = vld [vmem:[#allocation18_spill] sm:$0xff] }
 0x1e7   : > { %1549 = vrot.lane.b32.xlu0 %v1402_v12, %s2134_s21  ;;  %v798_v62 = vmul.f32 %v3342_v7, %v678_v14 }
 0x1ea   : > { %1068 = vrot.lane.b32.xlu1 %v2736_v30, %s2143_s19  ;;  %v3345_v30 = vld [vmem:[#allocation16_spill] sm:$0xff] }
 0x1eb   : > { %1134 = vrot.lane.b32.xlu0 %v1043_v36, %s2143_s19  ;;  %v1369_v36 = vmul.f32 0.0, %v2480_v53  ;;  %v786_v27 = vsel %vm785_vm3, %v3351_v22, %v3345_v30 }
 0x1ec   : > { %v795_v34 = vmul.f32 %v786_v27, %v2844_v6  ;;  %v1497_v6 = vsel %vm708_vm4, %v3346_v3, %v3349_v0 }
 0x1ed   : > { %v1374_v58 = vadd.f32 %v1369_v36, %v1284_v61  ;;  %v1506_v50 = vmul.f32 %v1497_v6, %v2908_v47  ;;  %v3353_v6 = vld [vmem:[#allocation28_spill] sm:$0xff] }
 0x1ee   : > { %1072 = vrot.lane.b32.xlu1 %v2762_v59, %s2143_s19  ;;  %v787_v59 = vsel %vm785_vm3, %v3345_v30, %v3344_v9 }
 0x1ef   : > { %1138 = vrot.lane.b32.xlu0 %v1045_v44, %s2143_s19  ;;  %v796_v42 = vmul.f32 %v787_v59, %v2846_v21  ;;  %v1498_v21 = vsel %vm708_vm4, %v3349_v0, %v3348_v23 }
 0x1f0   : > { %v1507_v53 = vmul.f32 %v1498_v21, %v1387_v46 }
 0x1f2   : > { %1163 = vrot.lane.b32.xlu1 %v2784_v51, %s2143_s19  ;;  %v3347_v51 = vld [vmem:[#allocation19_spill] sm:$0xff] }
 0x1f3   : > { %812 = vrot.lane.b32.xlu0 %v798_v62, %s2137_s22  ;;  %v1496_v45 = vsel %vm708_vm4, %v3347_v51, %v3346_v3 }
 0x1f4   : > { %v1505_v39 = vmul.f32 %v1496_v45, %v1385_v63 }
 0x1f6   : > { %1412 = vrot.lane.b32.xlu1 %v2838_v54, %s2134_s21  ;;  %v3350_v54 = vld [vmem:[#allocation30_spill] sm:$0xff] }
 0x1f7   : > { %808 = vrot.lane.b32.xlu0 %v796_v42, %s2137_s22  ;;  %v794_v25 = vmul.f32 %v3351_v22, %v3350_v54 }
 0x1fa   : > { %1416 = vrot.lane.b32.xlu1 %v1374_v58, %s2134_s21 }
 0x1fb   : > { %1516 = vrot.lane.b32.xlu0 %v1505_v39, %s2134_s21 }
 0x1fe   : > { %1543 = vrot.lane.b32.xlu1 %v2790_v1, %s2134_s21  ;;  %v3352_v1 = vld [vmem:[#allocation27_spill] sm:$0xff] }
 0x1ff   : > { %1520 = vrot.lane.b32.xlu0 %v1507_v53, %s2134_s21  ;;  %v1312_v44 = vsel %vm555_vm2, %v1306_v8, %v3352_v1 }
 0x202   : > { %1547 = vrot.lane.b32.xlu1 %v2819_v26, %s2134_s21  ;;  %v1237_v26 = vmul.f32 %v2552_v2, %v2470_v48 }
 0x204   : > { %v1322_v10 = vadd.f32 %v1312_v44, %v1237_v26 }
 0x206   : > { %1136 = vrot.lane.b32.xlu1 %v2882_v29, %s2143_s19  ;;  %v788_v29 = vsel %vm785_vm3, %v3344_v9, %v3342_v7  ;;  %v1388_v48 = vadd.f32 %v1383_v37, %v1322_v10  ;;  %v1617_v37 = vld [vmem:[%s3277_s6] sm:$0xf] }
 0x207   : > { %v797_v28 = vmul.f32 %v788_v29, %v2868_v11 }
 0x208   : > { %v1508_v2 = vmul.f32 %v3348_v23, %v1388_v48  ;;  %v1160_v17 = vpop.permute.xlu1 %1159 }
 0x20a   : > { %804 = vrot.lane.b32.xlu1 %v794_v25, %s2137_s22 }
 0x20e   : > { %806 = vrot.lane.b32.xlu1 %v795_v34, %s2137_s22 }
 0x212   : > { %810 = vrot.lane.b32.xlu1 %v797_v28, %s2137_s22  ;;  %s1894_s22 = sshll.u32 %s2213_s9, 8  ;;  %s2146_s9 = smov [#allocation6]  }
 0x213   : > { %s2046_s10 = sshll.u32 %s2146_s9, 4  ;;  %s2047_s10 = int_to_ptr.vmem [resolvable:$false] %s2046_s10 }
 0x214   : > { %v1067_v24 = vpop.permute.xlu0 %1066  ;;  %s2048_s12 = scalar_lea.vmem %s2047_s10, 512 }
 0x216   : > { %1518 = vrot.lane.b32.xlu1 %v1506_v50, %s2134_s21  ;;  %v1504_v50 = vmul.f32 %v3347_v51, %v3353_v6 }
 0x218   : > { %v1409_v47 = vpop.permute.xlu1 %1408 }
 0x21a   : > { %1522 = vrot.lane.b32.xlu1 %v1508_v2, %s2134_s21 }
 0x21c   : > { %v3002_v11 = vpop.permute.xlu0 %1541 }
 0x220   : > { %v1133_v57 = vpop.permute.xlu0 %1132 }
 0x224   : > { %v699_v13 = vpop.permute.xlu0 %698 }
 0x228   : > { %v707_v40 = vpop.permute.xlu0 %706 }
 0x22c   : > { %v832_v4 = vpop.permute.xlu0 %831 }
 0x230   : > { %v840_v41 = vpop.permute.xlu0 %839 }
 0x234   : > { %v1075_v15 = vpop.permute.xlu0 %1074 }
 0x238   : > { %v1168_v43 = vpop.permute.xlu1 %1167 }
 0x239   : > { %v703_v63 = vpop.permute.xlu0 %702 }
 0x23d   : > { %v836_v8 = vpop.permute.xlu0 %835 }
 0x241   : > { %v1071_v49 = vpop.permute.xlu0 %1070 }
 0x245   : > { %v1162_v52 = vpop.permute.xlu0 %1161 }
 0x246   : > { %v1169_v39 = vsel %vm555_vm2, %v1160_v17, %v1162_v52 }
 0x248   : > { %v3004_v5 = vpop.permute.xlu1 %1140 }
 0x249   : > { %v1166_v46 = vpop.permute.xlu0 %1165 }
 0x24a   : > { %v1172_v21 = vsel %vm555_vm2, %v1166_v46, %v1168_v43 }
 0x24c   : > { %v701_v32 = vpop.permute.xlu1 %700 }
 0x24d   : > { %v1411_v31 = vpop.permute.xlu0 %1410  ;;  %v709_v16 = vsel %vm708_vm4, %v699_v13, %v701_v32  ;;  %v710_v35 = vsel %vm708_vm4, %v701_v32, %v703_v63  ;;  %v3354_v32 = vlaneseq }
 0x24e   : > { %719 = vrot.lane.b32.xlu0 %v710_v35, %s2144_s23  ;;  %717 = vrot.lane.b32.xlu1 %v709_v16, %s2144_s23  ;;  %v1418_v22 = vsel %vm785_vm3, %v1409_v47, %v1411_v31  ;;  %v732_v16 = vld [vmem:[#allocation3] ss:$8 sm:$0xf] }
 0x250   : > { %v705_v55 = vpop.permute.xlu1 %704 }
 0x251   : > { %v1415_v18 = vpop.permute.xlu0 %1414  ;;  %v711_v12 = vsel %vm708_vm4, %v703_v63, %v705_v55  ;;  %v712_v33 = vsel %vm708_vm4, %v705_v55, %v707_v40 }
 0x252   : > { %723 = vrot.lane.b32.xlu0 %v712_v33, %s2144_s23  ;;  %721 = vrot.lane.b32.xlu1 %v711_v12, %s2144_s23  ;;  %v3089_v12 = vld [vmem:[#allocation3 + $0x3] ss:$8 sm:$0xf] }
 0x253   : > { %v3355_v33 = vld [vmem:[#allocation11_spill] sm:$0xff] }
 0x254   : > { %v834_v60 = vpop.permute.xlu1 %833 }
 0x255   : > { %v1546_v56 = vpop.permute.xlu0 %1545  ;;  %v841_v14 = vsel %vm708_vm4, %v832_v4, %v834_v60  ;;  %v842_v7 = vsel %vm708_vm4, %v834_v60, %v836_v8  ;;  %v741_v60 = vrot.slane %v732_v16, %v3355_v33 }
 0x256   : > { %851 = vrot.lane.b32.xlu0 %v842_v7, %s2145_s25  ;;  %849 = vrot.lane.b32.xlu1 %v841_v14, %s2145_s25  ;;  %v3357_v7 = vld [vmem:[#allocation14_spill] sm:$0xff] }
 0x258   : > { %v838_v62 = vpop.permute.xlu1 %837 }
 0x259   : > { %v1550_v20 = vpop.permute.xlu0 %1549  ;;  %v843_v19 = vsel %vm708_vm4, %v836_v8, %v838_v62  ;;  %v844_v38 = vsel %vm708_vm4, %v838_v62, %v840_v41  ;;  %v745_v62 = vrot.slane %v732_v16, %v3357_v7 }
 0x25a   : > { %855 = vrot.lane.b32.xlu0 %v844_v38, %s2145_s25  ;;  %853 = vrot.lane.b32.xlu1 %v843_v19, %s2145_s25  ;;  %v3095_v38 = vld [vmem:[#allocation3 + $0x5] ss:$8 sm:$0xf] }
 0x25c   : > { %v1069_v9 = vpop.permute.xlu1 %1068 }
 0x25d   : > { %v3022_v30 = vpop.permute.xlu0 %1134  ;;  %v1076_v59 = vsel %vm555_vm2, %v1067_v24, %v1069_v9  ;;  %v1077_v61 = vsel %vm555_vm2, %v1069_v9, %v1071_v49 }
 0x25e   : > { %v3028_v42 = vsel %vm555_vm2, %v1133_v57, %v3022_v30  ;;  %1086 = vrot.lane.b32.xlu1 %v1077_v61, %s2144_s23  ;;  %1084 = vrot.lane.b32.xlu0 %v1076_v59, %s2144_s23 }
 0x260   : > { %v1073_v36 = vpop.permute.xlu1 %1072 }
 0x261   : > { %v1078_v3 = vsel %vm555_vm2, %v1071_v49, %v1073_v36  ;;  %v1079_v45 = vsel %vm555_vm2, %v1073_v36, %v1075_v15  ;;  %v3069_v2 = vpop.permute.xlu0 %1138 }
 0x262   : > { %1090 = vrot.lane.b32.xlu1 %v1079_v45, %s2144_s23  ;;  %1088 = vrot.lane.b32.xlu0 %v1078_v3, %s2144_s23 }
 0x264   : > { %v1164_v58 = vpop.permute.xlu1 %1163 }
 0x265   : > { %v1170_v23 = vsel %vm555_vm2, %v1162_v52, %v1164_v58  ;;  %v1171_v53 = vsel %vm555_vm2, %v1164_v58, %v1166_v46 }
 0x266   : > { %1177 = vrot.lane.b32.xlu0 %v1169_v39, %s2145_s25  ;;  %1179 = vrot.lane.b32.xlu1 %v1170_v23, %s2145_s25  ;;  %v1106_v39 = vrot.slane %v3089_v12, %v3355_v33  ;;  %v1110_v23 = vrot.slane %v3089_v12, %v3357_v7 }
 0x268   : > { %v1413_v0 = vpop.permute.xlu1 %1412 }
 0x269   : > { %v1419_v25 = vsel %vm785_vm3, %v1411_v31, %v1413_v0  ;;  %v1420_v34 = vsel %vm785_vm3, %v1413_v0, %v1415_v18  ;;  %v3086_v31 = vand.u32 127, %v3354_v32 }
 0x26a   : > { %1181 = vrot.lane.b32.xlu0 %v1171_v53, %s2145_s25  ;;  %1183 = vrot.lane.b32.xlu1 %v1172_v21, %s2145_s25 }
 0x26b   : > { %vm727_vm5 = vcmp.lt.s32.totalorder %v3086_v31, 1  ;;  %vm857_vm6 = vcmp.lt.s32.totalorder %v3086_v31, 127 }
 0x26c   : > { %v1417_v54 = vpop.permute.xlu1 %1416 }
 0x26d   : > { %v1421_v1 = vsel %vm785_vm3, %v1415_v18, %v1417_v54  ;;  %v863_v18 = vld [vmem:[#allocation3 + $0x2] ss:$8 sm:$0xf] }
 0x26e   : > { %1426 = vrot.lane.b32.xlu1 %v1418_v22, %s2144_s23  ;;  %1428 = vrot.lane.b32.xlu0 %v1419_v25, %s2144_s23  ;;  %v872_v61 = vrot.slane %v863_v18, %v3355_v33  ;;  %v876_v58 = vrot.slane %v863_v18, %v3357_v7 }
 0x270   : > { %v1544_v27 = vpop.permute.xlu1 %1543 }
 0x271   : > { %v1551_v44 = vsel %vm785_vm3, %v3002_v11, %v1544_v27  ;;  %v1552_v26 = vsel %vm785_vm3, %v1544_v27, %v1546_v56  ;;  %v3071_v11 = vpop.permute.xlu0 %812  ;;  %v1199_v27 = vrot.slane %v3095_v38, %v3355_v33 }
 0x272   : > { %1430 = vrot.lane.b32.xlu1 %v1420_v34, %s2144_s23  ;;  %1432 = vrot.lane.b32.xlu0 %v1421_v1, %s2144_s23  ;;  %v1203_v34 = vrot.slane %v3095_v38, %v3357_v7 }
 0x274   : > { %v1548_v29 = vpop.permute.xlu1 %1547 }
 0x275   : > { %v1553_v28 = vsel %vm785_vm3, %v1546_v56, %v1548_v29  ;;  %v1554_v10 = vsel %vm785_vm3, %v1548_v29, %v1550_v20  ;;  %v3073_v13 = vpop.permute.xlu0 %808  ;;  %v3356_v56 = vld [vmem:[#allocation13_spill] sm:$0xff]  ;;  %v3358_v20 = vld [vmem:[#allocation12_spill] sm:$0xff] }
 0x276   : > { %1561 = vrot.lane.b32.xlu1 %v1552_v26, %s2145_s25  ;;  %1559 = vrot.lane.b32.xlu0 %v1551_v44, %s2145_s25  ;;  %v737_v14 = vrot.slane %v732_v16, %v3356_v56  ;;  %v749_v19 = vrot.slane %v732_v16, %v3358_v20  ;;  %v868_v9 = vrot.slane %v863_v18, %v3356_v56 }
 0x277   : > { %v880_v59 = vrot.slane %v863_v18, %v3358_v20  ;;  %v1102_v21 = vrot.slane %v3089_v12, %v3356_v56  ;;  %v1114_v53 = vrot.slane %v3089_v12, %v3358_v20  ;;  %v1195_v54 = vrot.slane %v3095_v38, %v3356_v56 }
 0x278   : > { %v3067_v48 = vpop.permute.xlu1 %1136 }
 0x279   : > { %v3077_v4 = vpop.permute.xlu0 %1516 }
 0x27a   : > { %1565 = vrot.lane.b32.xlu1 %v1554_v10, %s2145_s25  ;;  %1563 = vrot.lane.b32.xlu0 %v1553_v28, %s2145_s25  ;;  %v1207_v10 = vrot.slane %v3095_v38, %v3358_v20  ;;  %s3229_s25 = scalar_lea.hbm %s3279_s8, %s1894_s22 }
 0x27c   : > { %v805_v24 = vpop.permute.xlu1 %804 }
 0x27d   : > { %v3081_v51 = vpop.permute.xlu0 %1520 }
 0x27e   : > { %1620 = vperm.xlu1 %2008, %v1617_v37   ;;  %1514 = vrot.lane.b32.xlu0 %v1504_v50, %s2134_s21  ;;  %s1877_s21 = sshll.u32 %s311_s18, 4 }
 0x27f   : > { %s313_s20 = scalar_lea.vmem [#allocation6], %s1877_s21 }
 0x280   : > { %v807_v57 = vpop.permute.xlu1 %806  ;;  %s1800_s17 = sshll.u32 %s313_s20, 4  ;;  %s3231_s17 = int_to_ptr.vmem [resolvable:$true] %s1800_s17 }
 0x281   : > { %v814_v37 = vsel %vm708_vm4, %v805_v24, %v807_v57  ;;  %s2042_s26 = scalar_lea.vmem %s3231_s17, 256  ;;  %p2049_p2 = scmp.lt.s32.totalorder %s3231_s17, %s2047_s10 }
 0x282   : > { %p2043_p6 = scmp.ne.s32.totalorder %s3231_s17, %s2042_s26  ;;  %p2050_p3 = scmp.lt.s32.totalorder %s2048_s12, %s2042_s26 }
 0x284   : > { %v3075_v40 = vpop.permute.xlu1 %810  ;;  %p2044_p10 = pnand %p2043_p6, %p3362_p9  ;;  %p2051_p4 = por %p2050_p3, %p2049_p2 }
 0x286   : > { %p2045_p12 = pneg %p2044_p10 }
 0x288   : > { %v3079_v41 = vpop.permute.xlu1 %1518  ;;  %p2052_p7 = pnand %p2051_p4, %p2045_p12 }
 0x289   : > { %v1525_v38 = vsel %vm785_vm3, %v3077_v4, %v3079_v41 }
 0x28c   : > { %v3083_v15 = vpop.permute.xlu1 %1522 }
 0x2c0   : > { %v720_v63 = vpop.permute.xlu0 %719  ;;  %v718_v17 = vpop.permute.xlu1 %717 }
 0x2c1   : > { %v730_v45 = vsel %vm727_vm5, %v718_v17, %v720_v63 }
 0x2c2   : > { %v755_v1 = vmul.f32 %v741_v60, %v730_v45 }
 0x2c4   : > { %v724_v8 = vpop.permute.xlu0 %723  ;;  %v722_v47 = vpop.permute.xlu1 %721 }
 0x2c5   : > { %v729_v0 = vsel %vm727_vm5, %v720_v63, %v722_v47  ;;  %v728_v22 = vsel %vm727_vm5, %v722_v47, %v724_v8  ;;  %v731_v44 = vsel %vm727_vm5, %v724_v8, %v718_v17  ;;  %v815_v17 = vsel %vm708_vm4, %v807_v57, %v3073_v13 }
 0x2c6   : > { %v756_v6 = vmul.f32 %v745_v62, %v729_v0  ;;  %v757_v8 = vmul.f32 %v749_v19, %v728_v22  ;;  %v754_v32 = vmul.f32 %v737_v14, %v731_v44  ;;  %v823_v12 = vadd.f32 %v815_v17, %v755_v1 }
 0x2c7   : > { %v1144_v17 = vsel %vm555_vm2, %v3067_v48, %v3069_v2 }
 0x2c8   : > { %v852_v49 = vpop.permute.xlu0 %851  ;;  %v850_v43 = vpop.permute.xlu1 %849  ;;  %v822_v0 = vadd.f32 %v814_v37, %v754_v32 }
 0x2c9   : > { %v860_v16 = vsel %vm857_vm6, %v850_v43, %v852_v49 }
 0x2ca   : > { %v885_v45 = vmul.f32 %v868_v9, %v860_v16 }
 0x2cc   : > { %v856_v52 = vpop.permute.xlu0 %855  ;;  %v854_v46 = vpop.permute.xlu1 %853 }
 0x2cd   : > { %v859_v25 = vsel %vm857_vm6, %v852_v49, %v854_v46  ;;  %v858_v26 = vsel %vm857_vm6, %v854_v46, %v856_v52  ;;  %v861_v50 = vsel %vm857_vm6, %v856_v52, %v850_v43  ;;  %v816_v52 = vsel %vm708_vm4, %v3073_v13, %v3075_v40 }
 0x2ce   : > { %v886_v47 = vmul.f32 %v872_v61, %v859_v25  ;;  %v887_v24 = vmul.f32 %v876_v58, %v858_v26  ;;  %v888_v60 = vmul.f32 %v880_v59, %v861_v50  ;;  %v3146_v61 = vld [vmem:[#allocation3 + $0x6] ss:$8 sm:$0xf]  ;;  %v824_v49 = vadd.f32 %v816_v52, %v756_v6 }
 0x2cf   : > { %v1448_v22 = vrot.slane %v3146_v61, %v3355_v33  ;;  %v1452_v44 = vrot.slane %v3146_v61, %v3357_v7  ;;  %v889_v26 = vadd.f32 %v885_v45, %v822_v0  ;;  %v1145_v50 = vsel %vm555_vm2, %v3069_v2, %v3004_v5 }
 0x2d0   : > { %v1085_v35 = vpop.permute.xlu0 %1084  ;;  %v1087_v55 = vpop.permute.xlu1 %1086  ;;  %v890_v58 = vadd.f32 %v886_v47, %v823_v12  ;;  %v891_v59 = vadd.f32 %v887_v24, %v824_v49 }
 0x2d1   : > { %v1094_v63 = vsel %vm727_vm5, %v1085_v35, %v1087_v55 }
 0x2d2   : > { %v1120_v57 = vmul.f32 %v1106_v39, %v1094_v63  ;;  %v1143_v63 = vsel %vm555_vm2, %v3022_v30, %v3067_v48 }
 0x2d4   : > { %v1089_v36 = vpop.permute.xlu0 %1088  ;;  %v1091_v3 = vpop.permute.xlu1 %1090  ;;  %v1124_v1 = vadd.f32 %v1120_v57, %v890_v58  ;;  %v1527_v58 = vsel %vm785_vm3, %v3081_v51, %v3083_v15 }
 0x2d5   : > { %v1093_v46 = vsel %vm727_vm5, %v1087_v55, %v1089_v36  ;;  %v1092_v18 = vsel %vm727_vm5, %v1089_v36, %v1091_v3  ;;  %v817_v55 = vsel %vm708_vm4, %v3075_v40, %v3071_v11  ;;  %v1095_v14 = vsel %vm727_vm5, %v1091_v3, %v1085_v35 }
 0x2d6   : > { %v1121_v43 = vmul.f32 %v1110_v23, %v1093_v46  ;;  %v825_v36 = vadd.f32 %v817_v55, %v757_v8  ;;  %v1122_v13 = vmul.f32 %v1114_v53, %v1092_v18  ;;  %v1119_v11 = vmul.f32 %v1102_v21, %v1095_v14  ;;  %v1572_v55 = vld [vmem:[#allocation3 + $0x20] ss:$8 sm:$0xf] }
 0x2d7   : > { %v1456_v21 = vrot.slane %v3146_v61, %v3358_v20  ;;  %v1151_v46 = vadd.f32 %v1143_v63, %v1124_v1  ;;  %v1581_v45 = vrot.slane %v1572_v55, %v3355_v33 }
 0x2d8   : > { %v1178_v29 = vpop.permute.xlu0 %1177  ;;  %v1180_v28 = vpop.permute.xlu1 %1179  ;;  %v892_v25 = vadd.f32 %v888_v60, %v825_v36  ;;  %v1125_v3 = vadd.f32 %v1121_v43, %v891_v59  ;;  %v1123_v47 = vadd.f32 %v1119_v11, %v889_v26  ;;  %v3359_v26 = vld [vmem:[#allocation25_spill] sm:$0xff] }
 0x2d9   : > { %v1187_v18 = vsel %vm857_vm6, %v1178_v29, %v1180_v28 }
 0x2da   : > { %v1126_v37 = vadd.f32 %v1122_v13, %v892_v25  ;;  %v1152_v52 = vadd.f32 %v1144_v17, %v1125_v3  ;;  %v1150_v57 = vadd.f32 %v3028_v42, %v1123_v47  ;;  %v1589_v42 = vrot.slane %v1572_v55, %v3358_v20  ;;  %v1616_v47 = vld [vmem:[%s3276_s5] sm:$0xf] }
 0x2db   : > { %v1577_v13 = vrot.slane %v1572_v55, %v3356_v56 }
 0x2dc   : > { %v1182_v62 = vpop.permute.xlu0 %1181  ;;  %v1184_v19 = vpop.permute.xlu1 %1183  ;;  %v1153_v60 = vadd.f32 %v1145_v50, %v1126_v37 }
 0x2dd   : > { %v1186_v39 = vsel %vm857_vm6, %v1180_v28, %v1182_v62  ;;  %v1185_v40 = vsel %vm857_vm6, %v1182_v62, %v1184_v19  ;;  %v1188_v9 = vsel %vm857_vm6, %v1184_v19, %v1178_v29  ;;  %v1212_v29 = vmul.f32 %v1195_v54, %v1187_v18 }
 0x2de   : > { %v1213_v6 = vmul.f32 %v1199_v27, %v1186_v39  ;;  %v1214_v8 = vmul.f32 %v1203_v34, %v1185_v40  ;;  %v1215_v32 = vmul.f32 %v1207_v10, %v1188_v9  ;;  %v1444_v10 = vrot.slane %v3146_v61, %v3356_v56 }
 0x2df   : > { %v1585_v61 = vrot.slane %v1572_v55, %v3357_v7  ;;  %v1526_v54 = vsel %vm785_vm3, %v3079_v41, %v3081_v51  ;;  %v1216_v0 = vadd.f32 %v1212_v29, %v1150_v57  ;;  %v2013_v57 = vld [vmem:[%s2281_s24] sm:$0xff] }
 0x2e0   : > { %v1429_v23 = vpop.permute.xlu0 %1428  ;;  %v1427_v35 = vpop.permute.xlu1 %1426  ;;  %v1217_v12 = vadd.f32 %v1213_v6, %v1151_v46  ;;  %v1218_v34 = vadd.f32 %v1214_v8, %v1152_v52  ;;  %v1219_v28 = vadd.f32 %v1215_v32, %v1153_v60  ;;  %v2012_v52 = vld [vmem:[%s2281_s24 + $0x8] sm:$0xff]  ;;  %s1786_s24 = scalar_lea.sflag [#allocation5], %s311_s18 }
 0x2e1   : > { %v1436_v53 = vsel %vm727_vm5, %v1427_v35, %v1429_v23 }
 0x2e2   : > { %v1462_v27 = vmul.f32 %v1448_v22, %v1436_v53 }
 0x2e4   : > { %v1433_v16 = vpop.permute.xlu0 %1432  ;;  %v1431_v24 = vpop.permute.xlu1 %1430  ;;  %v1466_v62 = vadd.f32 %v1462_v27, %v1217_v12  ;;  %v3360_v12 = vld [vmem:[#allocation10_spill] sm:$0xff] }
 0x2e5   : > { %v1434_v5 = vsel %vm727_vm5, %v1431_v24, %v1433_v16  ;;  %v1435_v30 = vsel %vm727_vm5, %v1429_v23, %v1431_v24  ;;  %v1437_v43 = vsel %vm727_vm5, %v1433_v16, %v1427_v35 }
 0x2e6   : > { %v1463_v48 = vmul.f32 %v1452_v44, %v1435_v30  ;;  %v1464_v2 = vmul.f32 %v1456_v21, %v1434_v5  ;;  %v1461_v33 = vmul.f32 %v1444_v10, %v1437_v43  ;;  %v1533_v59 = vadd.f32 %v1525_v38, %v1466_v62 }
 0x2e8   : > { %v1560_v19 = vpop.permute.xlu0 %1559  ;;  %v1562_v49 = vpop.permute.xlu1 %1561  ;;  %v1467_v14 = vadd.f32 %v1463_v48, %v1218_v34  ;;  %v1468_v36 = vadd.f32 %v1464_v2, %v1219_v28  ;;  %v1465_v9 = vadd.f32 %v1461_v33, %v1216_v0  ;;  %v3361_v28 = vld [vmem:[#allocation9_spill] sm:$0xff] }
 0x2e9   : > { %v1569_v7 = vsel %vm857_vm6, %v1560_v19, %v1562_v49 }
 0x2ea   : > { %v1534_v25 = vadd.f32 %v1526_v54, %v1467_v14  ;;  %v1535_v56 = vadd.f32 %v1527_v58, %v1468_v36  ;;  %v1594_v53 = vmul.f32 %v1577_v13, %v1569_v7 }
 0x2ec   : > { %v1564_v20 = vpop.permute.xlu0 %1563  ;;  %v1566_v39 = vpop.permute.xlu1 %1565 }
 0x2ed   : > { %v1568_v22 = vsel %vm857_vm6, %v1562_v49, %v1564_v20  ;;  %v1567_v41 = vsel %vm857_vm6, %v1564_v20, %v1566_v39  ;;  %v1570_v51 = vsel %vm857_vm6, %v1566_v39, %v1560_v19 }
 0x2ee   : > { %v1595_v15 = vmul.f32 %v1581_v45, %v1568_v22  ;;  %v1596_v1 = vmul.f32 %v1585_v61, %v1567_v41  ;;  %v1597_v11 = vmul.f32 %v1589_v42, %v1570_v51 }
 0x2f0   : > { %v1599_v40 = vadd.f32 %v1595_v15, %v1533_v59  ;;  %v1600_v23 = vadd.f32 %v1596_v1, %v1534_v25  ;;  %v1601_v35 = vadd.f32 %v1597_v11, %v1535_v56  ;;  %v1515_v3 = vpop.permute.xlu0 %1514 }
 0x2f1   : > { %v1524_v44 = vsel %vm785_vm3, %v1515_v3, %v3077_v4 }
 0x2f2   : > { %v1610_v37 = vadd.f32 %v3359_v26, %v1600_v23  ;;  %v1532_v6 = vadd.f32 %v1524_v44, %v1465_v9  ;;  %v1609_v21 = vadd.f32 %v3359_v26, %v1599_v40  ;;  %v1611_v31 = vadd.f32 %v3359_v26, %v1601_v35 }
 0x2f4   : > { %v1614_v50 = vmax.f32 %v1610_v37, 0.0  ;;  %v1598_v63 = vadd.f32 %v1594_v53, %v1532_v6  ;;  %v1613_v17 = vmax.f32 %v1609_v21, 0.0  ;;  %v1615_v8 = vmax.f32 %v1611_v31, 0.0 }
 0x2f6   : > { %v1608_v4 = vadd.f32 %v3359_v26, %v1598_v63  ;;  %1627 = vmatprep.subr.mxu0 %v1613_v17  ;;  %1698 = vmatprep.subr.mxu1 %v1615_v8 }
 0x2f7   : > { %1699 = vmatpush1.msra.mxu1 %v1614_v50 }
 0x2f8   : > { %v1612_v46 = vmax.f32 %v1608_v4, 0.0  ;;  %1887 = vmatmul.mubr.msk.f32.vlgmr.msra.gmra.mrb[2].mxu1 %vm1623_vm7, %v1616_v47 }
 0x2fa   : > { %1628 = vmatpush1.msra.mxu0 %v1612_v46 }
 0x2fb   : > { %1886 = vmatmul.mubr.msk.f32.vlgmr.msra.gmra.mrb[2].mxu0 %vm1623_vm7, %v1616_v47 }
 0x2fd   : > { %v1621_v32 = vpop.permute.xlu1 %1620 }
 0x3cb   : > { %v1764_v27 = vpop.f32.mrb[2].mxu1 }
 0x3cc   : > { %v1765_v16 = vadd.f32 %v1764_v27, %v1621_v32  ;;  %v1766_v24 = vpop.f32.mrb[3].mxu1 }
 0x3cd   : > { %v1767_v18 = vadd.f32 %v1766_v24, %v1621_v32 }
 0x3ce   : > { %v1773_v5 = vadd.f32 %v2012_v52, %v1765_v16  ;;  %v1693_v30 = vpop.f32.mrb[2].mxu0 }
 0x3cf   : > { %v1774_v60 = vadd.f32 %v1767_v18, %v3360_v12  ;;  %v1694_v48 = vadd.f32 %v1693_v30, %v1621_v32  ;;  %v1695_v2 = vpop.f32.mrb[3].mxu0 }
 0x3d0   : > { %v1696_v34 = vadd.f32 %v1695_v2, %v1621_v32 }
 0x3d1   : > { %v1780_v10 = vcombine.low %v1773_v5, %v1774_v60  ;;  %v1771_v29 = vadd.f32 %v2013_v57, %v1694_v48 }
 0x3d2   : > { %v1772_v62 = vadd.f32 %v1696_v34, %v3361_v28 }
 0x3d3   : > { %1784 = vst [vmem:[%s313_s20 + $0x8] sm:$0xff] %v1780_v10 }
 0x3d4   : > { %v1779_v19 = vcombine.low %v1771_v29, %v1772_v62 }
 0x3d6   : > { %1783 = vst [vmem:[%s313_s20] sm:$0xff] %v1779_v19 }
 0x3d7   : > { %2055 = shalt.err (!%p2052_p7)
}
 0x3d8   : > { %s2056_s13 = scalar_lea.hbm %s3229_s25, 256  ;;  %s2060_s22 = scalar_lea.hbm %s3279_s8, 512 }
 0x3d9   : > { %p2057_p8 = scmp.ne.s32.totalorder %s3229_s25, %s2056_s13  ;;  %p2061_p1 = scmp.lt.u32.totalorder %s3229_s25, %s3279_s8 }
 0x3da   : > { %p2062_p0 = scmp.lt.u32.totalorder %s2060_s22, %s2056_s13  ;;  %p2064_p6 = scmp.lt.u32.totalorder %s2056_s13, %s3229_s25 }
 0x3db   : > { %p2058_p11 = pnand %p2057_p8, %p3362_p9 }
 0x3dc   : > { %p2063_p5 = por %p2062_p0, %p2061_p1 }
 0x3dd   : > { %p2059_p13 = pneg %p2058_p11 }
 0x3de   : > { %p2065_p10 = por %p2064_p6, %p2063_p5 }
 0x3e0   : > { %p2066_p12 = pnand %p2065_p10, %p2059_p13 }
 0x3e2   : > { %2069 = shalt.err (!%p2066_p12)
}
 0x3e3   : > { %1899 = dma.vmem_to_hbm [thread:$0]  (%p3362_p9), %s3231_s17, 256, %s3229_s25, %s1786_s24  }
 0x3e4 PF: > { %p1911_p2 = scmp.ge.s32.totalorder %s2108_s30, 2  ;;  %s1812_s23 = sand.u32 1, %s2096_s27  }
 0x3e5   : > { %p3363_p3 = scmp.ne.s32.totalorder %s3307_s16, 0  ;;  %s1813_s26 = scalar_lea.sflag [#allocation5], %s1812_s23 }
 0x3e7   : > { %p1906_p4 = pnand %p1911_p2, %p3363_p3 }
 0x3e9   : > { %2091 = dma.done.wait (!%p1906_p4), %s1813_s26, 256  }
 0x3ea   : > { %2093 = vsyncadd (!%p1906_p4), %s1813_s26, 4294967040  ;;  %p19_p7 = scmp.ge.s32.totalorder %s2217_s11, 4   ;;  %s3364_s27 = smov %s2100_s28 }
 0x3eb   : > { %s3365_s28 = smov %s2104_s29  ;;  %s3366_s29 = smov %s2228_s14 }
 0x3ec   : > { %s3367_s30 = smov %s2217_s11  ;;  %21 = sbr.rel (!%p19_p7) target bundleno = 4 (0x4), region = 99 }
 0x3f3   :  { %1818 = vsyncpa [#allocation4], 1 }
 0x3f4   :  { %1820 = vsyncpa [#allocation4 + $0x1], 1 }
 0x3f5   :  { %1821 = vsyncpa [#allocation5], 1 }
 0x3f6   :  { %1823 = vsyncpa [#allocation5 + $0x1], 1 }

</bundles_post_ra>
